<compile_context>
chip_gen: v7x
topology: tpu7x:2x2x1
jax: 0.10.0
libtpu: 0.0.40
codegen_flags: <defaults>
</compile_context>

<pallas_src>
import math

import numpy as np
import jax
import jax.numpy as jnp
from jax import lax
from jax.experimental import pallas as pl
from jax.experimental.pallas import tpu as pltpu

NEG_SLOPE = 0.2                       # PyG GATConv default leaky_relu slope
_EDGE_NEG = -1e30                     # additive mask for non-edges (f32)
_HEAD_NEG = -1e9                      # matches masked_fill(resmask == 0, -1e9)
_LOGP_MIN = math.log(1e-10)           # == log of torch clamp(min=1e-10)


# ----------------------------------------------------------------------------- kernel
def _gat_layer(x, adj_bias, w_aug, att_src_aug, b):
    """Fused dense single-head GATConv (concat=False) + ReLU for one graph.

    x           [N, D]      node features
    adj_bias    [N, N]      0 where edge j->i, -1e30 otherwise
    w_aug       [D, D+1]    [ W | W @ att_dst ]  (dst score folded into matmul)
    att_src_aug [1, D+1]    [ att_src | 0 ]
    b           [1, D]      bias
    """
    N, D = x.shape[0], x.shape[1]
    # One MXU matmul gives transformed nodes AND the dst attention score column.
    y = jnp.dot(x, w_aug, preferred_element_type=jnp.float32)           # [N, D+1]
    e_dst = y[:, D:D + 1]                                                # [N, 1]
    # Src score as a lane-dense row, on the MXU (last lane of att_src_aug is 0).
    e_src = lax.dot_general(att_src_aug, y, (((1,), (1,)), ((), ())),
                            preferred_element_type=jnp.float32)          # [1, N]
    e = e_dst + e_src                                                     # [N, N]
    e = jnp.where(e > 0, e, NEG_SLOPE * e)                                # LeakyReLU
    e = e + adj_bias                                                      # mask non-edges (1 add)
    m = jnp.max(e, axis=-1, keepdims=True)
    p = jnp.exp(e - m)                                                    # unnormalized attention
    # Overwrite the (already consumed) dst-score column with ones so one MXU matmul
    # produces both p@h and the softmax denominator.
    lane = lax.broadcasted_iota(jnp.int32, y.shape, 1)
    h_ones = jnp.where(lane == D, 1.0, y)                                 # [N, D+1]
    agg = jnp.dot(p, h_ones, preferred_element_type=jnp.float32)          # [N, D+1]
    denom = agg[:, D:D + 1]                                               # softmax row sums
    out = agg[:, :D] / denom + b                                          # exact normalization
    # F.relu; F.dropout is identity (eval-mode semantics).
    # TODO(synk): training-mode dropout (random mask) intentionally not modeled.
    return jnp.maximum(out, 0.0)


def nl_encoder_kernel(x_ref, adj_ref, mask_ref, res_ref,
                      w1_ref, a1_ref, b1_ref,
                      w2_ref, a2_ref, b2_ref,
                      wlin_ref, blin_ref,
                      loss_ref, softmax_ref, xout_ref):
    # Weights are resident (constant index_map); load once per grid step.
    w1, a1, b1 = w1_ref[...], a1_ref[...], b1_ref[...]
    w2, a2, b2 = w2_ref[...], a2_ref[...], b2_ref[...]
    wlin, blin = wlin_ref[...], blin_ref[...]

    Bt = x_ref.shape[0]                 # graphs per grid step (static, small)
    for g in range(Bt):                 # static unrolled loop: amortizes step overhead
        x = x_ref[g]                                                     # [N, D]
        adj = adj_ref[g]                                                 # [N, N]
        # Build the additive edge mask in-kernel (rides under MXU slack).
        adj_bias = jnp.where(adj > 0, 0.0, _EDGE_NEG)

        # GAT block: conv1 -> relu -> (dropout) -> conv2 -> relu -> (dropout)
        x1 = _gat_layer(x, adj_bias, w1, a1, b1)
        x2 = _gat_layer(x1, adj_bias, w2, a2, b2)
        xout_ref[g] = x2

        # resLinear2: li = (x2 @ w + b).squeeze(-1), computed directly as a [1, N] row.
        li = lax.dot_general(wlin, x2, (((1,), (1,)), ((), ())),
                             preferred_element_type=jnp.float32) + blin  # [1, N]
        li = li + jnp.where(mask_ref[g] == 0, _HEAD_NEG, 0.0)            # masked_fill as bias
        m = jnp.max(li, axis=-1, keepdims=True)
        ex = jnp.exp(li - m)
        denom = jnp.sum(ex, axis=-1, keepdims=True)                      # [1, 1]
        softmax_ref[g] = ex / denom                                      # exact softmax(dim=-1)
        # loss = -log(clamp(p, 1e-10, 1)) . res, via log-sum-exp (clip logp == clamp p).
        logp = jnp.clip((li - m) - jnp.log(denom), _LOGP_MIN, 0.0)
        loss_ref[g] = jnp.sum(-logp * res_ref[g], axis=-1, keepdims=True)  # [1, 1]


# ----------------------------------------------------------------------------- wrapper
def nl_encoder_forward(params, input_node, adj, res, resmask):
    B, N, D = input_node.shape
    f32 = jnp.float32

    # Grid: 2 parallel steps when possible (keeps both v7x TCs busy; ~0.35 us extra
    # on single-TC v5e/v6e). Each step handles Bt graphs in-kernel.
    G = 2 if (B % 2 == 0 and B >= 2) else 1
    Bt = B // G

    # One-time tiny host-side weight transforms reused by all graphs.
    def fold_dst(w, att):   # [D, D+1] = [ W | W @ att_dst ]
        return jnp.concatenate([w, jnp.dot(w, att[1].reshape(D, 1))], axis=1)

    def pad_src(att):       # [1, D+1] = [ att_src | 0 ]
        return jnp.concatenate([att[0:1, :], jnp.zeros((1, 1), f32)], axis=1)

    w1a, a1s = fold_dst(params["w1"], params["att1"]), pad_src(params["att1"])
    w2a, a2s = fold_dst(params["w2"], params["att2"]), pad_src(params["att2"])

    res_row = res.astype(f32).reshape(B, 1, N)
    mask_row = resmask.astype(f32).reshape(B, 1, N)

    def batched(shape):     # Bt graphs per grid step
        rest = tuple(shape[1:])
        return pl.BlockSpec((Bt,) + rest, lambda i, _n=len(rest): (i,) + (0,) * _n)

    def resident(shape):    # constant block index -> stays in VMEM across the grid
        return pl.BlockSpec(tuple(shape), lambda i, _n=len(shape): (0,) * _n)

    in_specs = [
        batched((B, N, D)),                                              # x
        batched((B, N, N)),                                              # adj (raw; bias built in-kernel)
        batched((B, 1, N)),                                              # resmask
        batched((B, 1, N)),                                              # res
        resident((D, D + 1)), resident((1, D + 1)), resident((1, D)),    # conv1
        resident((D, D + 1)), resident((1, D + 1)), resident((1, D)),    # conv2
        resident((1, D)), resident((1, 1)),                              # resLinear2
    ]
    out_specs = (
        batched((B, 1, 1)),                                              # loss
        batched((B, 1, N)),                                              # softmax
        batched((B, N, D)),                                              # x (GAT output)
    )
    out_shape = (jax.ShapeDtypeStruct((B, 1, 1), f32),
                 jax.ShapeDtypeStruct((B, 1, N), f32),
                 jax.ShapeDtypeStruct((B, N, D), f32))

    loss, p, x_out = pl.pallas_call(
        nl_encoder_kernel,
        grid=(G,),
        in_specs=in_specs,
        out_specs=out_specs,
        out_shape=out_shape,
        compiler_params=pltpu.CompilerParams(dimension_semantics=("parallel",)),
    )(input_node.astype(f32), adj.astype(f32), mask_row, res_row,
      w1a, a1s, params["b1"], w2a, a2s, params["b2"],
      params["wlin"], params["blin"])
    return loss.reshape(B), p.reshape(B, N), x_out


# ----------------------------------------------------------------------------- plain-JAX reference
def _gat_layer_ref(h_in, adj, w, att, b):
    h = jnp.dot(h_in, w, precision=lax.Precision.HIGHEST)                # [N, D]
    e_src = jnp.dot(att[0:1, :], h.T, precision=lax.Precision.HIGHEST)   # [1, N]
    e_dst = jnp.sum(h * att[1:2, :], axis=-1, keepdims=True)             # [N, 1]
    e = e_dst + e_src
    e = jnp.where(e > 0, e, NEG_SLOPE * e)
    e = jnp.where(adj > 0, e, _EDGE_NEG)
    alpha = jax.nn.softmax(e, axis=-1)
    out = jnp.dot(alpha, h, precision=lax.Precision.HIGHEST) + b
    return jnp.maximum(out, 0.0)


def _ref_forward_single(params, x, adj, res, resmask):
    x1 = _gat_layer_ref(x, adj, params["w1"], params["att1"], params["b1"])
    x2 = _gat_layer_ref(x1, adj, params["w2"], params["att2"], params["b2"])
    li = jnp.dot(x2, params["wlin"].T,
                 precision=lax.Precision.HIGHEST).reshape(-1) + params["blin"].reshape(())
    li = jnp.where(resmask == 0, _HEAD_NEG, li)
    p = jax.nn.softmax(li, axis=-1)
    loss = jnp.sum(-jnp.log(jnp.clip(p, 1e-10, 1.0)) * res)
    return loss, p, x2


def init_params(key, D):
    ks = jax.random.split(key, 6)
    scale = 0.2
    return {
        # GATConv1 / GATConv2: lin weight [D, D], att (src, dst) [2, D], bias [1, D]
        "w1":   scale * jax.random.normal(ks[0], (D, D), jnp.float32),
        "att1": scale * jax.random.normal(ks[1], (2, D), jnp.float32),
        "b1":   jnp.zeros((1, D), jnp.float32),
        "w2":   scale * jax.random.normal(ks[2], (D, D), jnp.float32),
        "att2": scale * jax.random.normal(ks[3], (2, D), jnp.float32),
        "b2":   jnp.zeros((1, D), jnp.float32),
        # resLinear2: Linear(D, 1) stored as a [1, D] row + [1, 1] bias
        "wlin": scale * jax.random.normal(ks[4], (1, D), jnp.float32),
        "blin": scale * jax.random.normal(ks[5], (1, 1), jnp.float32),
    }


if __name__ == "__main__":
    B, N, D = 4, 64, 16   # 4 graphs, 64 nodes each, embedding_size = 16
    key = jax.random.PRNGKey(0)
    k_x, k_adj, k_p = jax.random.split(key, 3)

    input_node = jax.random.normal(k_x, (B, N, D), jnp.float32)
    adj_rand = (jax.random.uniform(k_adj, (B, N, N)) < 0.15).astype(jnp.float32)
    adj = jnp.clip(adj_rand + jnp.eye(N, dtype=jnp.float32)[None], 0.0, 1.0)  # + self-loops
    counts = jnp.array([6, 5, 8, 7])                                          # candidates per graph
    resmask = (jnp.arange(N)[None, :] < counts[:, None]).astype(jnp.float32)  # [B, N]
    res = jax.nn.one_hot(jnp.array([2, 1, 3, 0]), N, dtype=jnp.float32)       # one-hot targets

    params = init_params(k_p, D)

    loss, resSoftmax, x_out = jax.block_until_ready(
        jax.jit(nl_encoder_forward)(params, input_node, adj, res, resmask))

    # masked_select(...).view(a, emb): data-dependent shape -> done on host with the
    # concrete mask (not expressible as a static-shape kernel output).
    # TODO(synk): masked_select has no static-shape Pallas equivalent.
    a0 = int(np.asarray(resmask[0]).sum())
    s0 = np.asarray(x_out[0])[np.asarray(resmask[0]) == 1.0].reshape(a0, D)
    assert s0.shape == (a0, D)

    # Check against the plain-JAX reference (exact in-kernel normalization now).
    ref_loss, ref_p, ref_x = jax.vmap(_ref_forward_single, in_axes=(None, 0, 0, 0, 0))(
        params, input_node, adj, res, resmask)
    np.testing.assert_allclose(np.asarray(resSoftmax), np.asarray(ref_p), rtol=2e-3, atol=2e-3)
    np.testing.assert_allclose(np.asarray(loss), np.asarray(ref_loss), rtol=2e-3, atol=2e-3)
    np.testing.assert_allclose(np.asarray(x_out), np.asarray(ref_x), rtol=2e-3, atol=2e-3)
    assert np.allclose(np.asarray(resSoftmax).sum(axis=-1), 1.0, atol=1e-4)

    print("KERNEL_OK")
</pallas_src>

<mosaic_0001>
module attributes {stable_mosaic.version = 11 : i64} {
  func.func @nl_encoder_kernel(%arg0: i32, %arg1: memref<2x64x16xf32, #tpu.memory_space<vmem>>, %arg2: memref<2x64x64xf32, #tpu.memory_space<vmem>>, %arg3: memref<2x1x64xf32, #tpu.memory_space<vmem>>, %arg4: memref<2x1x64xf32, #tpu.memory_space<vmem>>, %arg5: memref<16x17xf32, #tpu.memory_space<vmem>>, %arg6: memref<1x17xf32, #tpu.memory_space<vmem>>, %arg7: memref<1x16xf32, #tpu.memory_space<vmem>>, %arg8: memref<16x17xf32, #tpu.memory_space<vmem>>, %arg9: memref<1x17xf32, #tpu.memory_space<vmem>>, %arg10: memref<1x16xf32, #tpu.memory_space<vmem>>, %arg11: memref<1x16xf32, #tpu.memory_space<vmem>>, %arg12: memref<1x1xf32, #tpu.memory_space<vmem>>, %arg13: memref<2x1x1xf32, #tpu.memory_space<vmem>>, %arg14: memref<2x1x64xf32, #tpu.memory_space<vmem>>, %arg15: memref<2x64x16xf32, #tpu.memory_space<vmem>>) attributes {dimension_semantics = [#tpu.dimension_semantics<parallel>], iteration_bounds = array<i64: 2>, scalar_prefetch = 0 : i64, scratch_operands = 0 : i64, tpu.core_type = #tpu.core_type<tc>, window_params = [{transform_indices = @transform_0, window_bounds = array<i64: 2, 64, 16>}, {transform_indices = @transform_1, window_bounds = array<i64: 2, 64, 64>}, {transform_indices = @transform_2, window_bounds = array<i64: 2, 1, 64>}, {transform_indices = @transform_3, window_bounds = array<i64: 2, 1, 64>}, {pipeline_mode = #tpu.pipeline_mode<synchronous>, transform_indices = @transform_4, window_bounds = array<i64: 16, 17>}, {pipeline_mode = #tpu.pipeline_mode<synchronous>, transform_indices = @transform_5, window_bounds = array<i64: 1, 17>}, {pipeline_mode = #tpu.pipeline_mode<synchronous>, transform_indices = @transform_6, window_bounds = array<i64: 1, 16>}, {pipeline_mode = #tpu.pipeline_mode<synchronous>, transform_indices = @transform_7, window_bounds = array<i64: 16, 17>}, {pipeline_mode = #tpu.pipeline_mode<synchronous>, transform_indices = @transform_8, window_bounds = array<i64: 1, 17>}, {pipeline_mode = #tpu.pipeline_mode<synchronous>, transform_indices = @transform_9, window_bounds = array<i64: 1, 16>}, {pipeline_mode = #tpu.pipeline_mode<synchronous>, transform_indices = @transform_10, window_bounds = array<i64: 1, 16>}, {pipeline_mode = #tpu.pipeline_mode<synchronous>, transform_indices = @transform_11, window_bounds = array<i64: 1, 1>}, {transform_indices = @transform_12, window_bounds = array<i64: 2, 1, 1>}, {transform_indices = @transform_13, window_bounds = array<i64: 2, 1, 64>}, {transform_indices = @transform_14, window_bounds = array<i64: 2, 64, 16>}]} {
    %c0 = arith.constant 0 : index
    %c0_0 = arith.constant 0 : index
    %0 = vector.load %arg5[%c0, %c0_0] : memref<16x17xf32, #tpu.memory_space<vmem>>, vector<16x17xf32>
    %c0_1 = arith.constant 0 : index
    %c0_2 = arith.constant 0 : index
    %1 = vector.load %arg6[%c0_1, %c0_2] : memref<1x17xf32, #tpu.memory_space<vmem>>, vector<1x17xf32>
    %c0_3 = arith.constant 0 : index
    %c0_4 = arith.constant 0 : index
    %2 = vector.load %arg7[%c0_3, %c0_4] : memref<1x16xf32, #tpu.memory_space<vmem>>, vector<1x16xf32>
    %c0_5 = arith.constant 0 : index
    %c0_6 = arith.constant 0 : index
    %3 = vector.load %arg8[%c0_5, %c0_6] : memref<16x17xf32, #tpu.memory_space<vmem>>, vector<16x17xf32>
    %c0_7 = arith.constant 0 : index
    %c0_8 = arith.constant 0 : index
    %4 = vector.load %arg9[%c0_7, %c0_8] : memref<1x17xf32, #tpu.memory_space<vmem>>, vector<1x17xf32>
    %c0_9 = arith.constant 0 : index
    %c0_10 = arith.constant 0 : index
    %5 = vector.load %arg10[%c0_9, %c0_10] : memref<1x16xf32, #tpu.memory_space<vmem>>, vector<1x16xf32>
    %c0_11 = arith.constant 0 : index
    %c0_12 = arith.constant 0 : index
    %6 = vector.load %arg11[%c0_11, %c0_12] : memref<1x16xf32, #tpu.memory_space<vmem>>, vector<1x16xf32>
    %c0_13 = arith.constant 0 : index
    %c0_14 = arith.constant 0 : index
    %7 = vector.load %arg12[%c0_13, %c0_14] : memref<1x1xf32, #tpu.memory_space<vmem>>, vector<1x1xf32>
    %c0_15 = arith.constant 0 : index
    %c0_16 = arith.constant 0 : index
    %c0_17 = arith.constant 0 : index
    %8 = vector.load %arg1[%c0_15, %c0_16, %c0_17] : memref<2x64x16xf32, #tpu.memory_space<vmem>>, vector<1x64x16xf32>
    %9 = vector.shape_cast %8 : vector<1x64x16xf32> to vector<64x16xf32>
    %c0_18 = arith.constant 0 : index
    %c0_19 = arith.constant 0 : index
    %c0_20 = arith.constant 0 : index
    %10 = vector.load %arg2[%c0_18, %c0_19, %c0_20] : memref<2x64x64xf32, #tpu.memory_space<vmem>>, vector<1x64x64xf32>
    %11 = vector.shape_cast %10 : vector<1x64x64xf32> to vector<64x64xf32>
    %cst = arith.constant 0.000000e+00 : f32
    %12 = vector.broadcast %cst : f32 to vector<64x64xf32>
    %13 = arith.cmpf ogt, %11, %12 : vector<64x64xf32>
    %cst_21 = arith.constant 0.000000e+00 : f32
    %cst_22 = arith.constant -1.000000e+30 : f32
    %14 = vector.broadcast %cst_21 : f32 to vector<64x64xf32>
    %15 = vector.broadcast %cst_22 : f32 to vector<64x64xf32>
    %16 = arith.select %13, %14, %15 : vector<64x64xi1>, vector<64x64xf32>
    %cst_23 = arith.constant dense<0.000000e+00> : vector<64x17xf32>
    %17 = tpu.matmul %9, %0, %cst_23 {dimension_numbers = #tpu.dot_dimension_numbers<[1], [0], [0], [1], [0, 0, 1, 1], [], []>} : vector<64x16xf32>, vector<16x17xf32>, vector<64x17xf32> -> vector<64x17xf32>
    %18 = vector.extract_strided_slice %17 {offsets = [0, 16], sizes = [64, 1], strides = [1, 1]} : vector<64x17xf32> to vector<64x1xf32>
    %cst_24 = arith.constant dense<0.000000e+00> : vector<1x64xf32>
    %19 = tpu.matmul %1, %17, %cst_24 {dimension_numbers = #tpu.dot_dimension_numbers<[1], [1], [0], [0], [0, 0, 1, 0], [], []>} : vector<1x17xf32>, vector<64x17xf32>, vector<1x64xf32> -> vector<1x64xf32>
    %20 = vector.broadcast %18 : vector<64x1xf32> to vector<64x64xf32>
    %21 = vector.broadcast %19 : vector<1x64xf32> to vector<64x64xf32>
    %22 = arith.addf %20, %21 : vector<64x64xf32>
    %cst_25 = arith.constant 0.000000e+00 : f32
    %23 = vector.broadcast %cst_25 : f32 to vector<64x64xf32>
    %24 = arith.cmpf ogt, %22, %23 : vector<64x64xf32>
    %cst_26 = arith.constant 2.000000e-01 : f32
    %25 = vector.broadcast %cst_26 : f32 to vector<64x64xf32>
    %26 = arith.mulf %25, %22 : vector<64x64xf32>
    %27 = arith.select %24, %22, %26 : vector<64x64xi1>, vector<64x64xf32>
    %28 = arith.addf %27, %16 : vector<64x64xf32>
    %cst_27 = arith.constant dense<0xFF800000> : vector<64xf32>
    %29 = vector.multi_reduction <maximumf>, %28, %cst_27 [1] : vector<64x64xf32> to vector<64xf32>
    %30 = vector.shape_cast %29 : vector<64xf32> to vector<64x1xf32>
    %31 = vector.broadcast %30 : vector<64x1xf32> to vector<64x64xf32>
    %32 = arith.subf %28, %31 : vector<64x64xf32>
    %33 = math.exp %32 : vector<64x64xf32>
    %34 = tpu.iota {dimensions = array<i32: 1>} : vector<64x17xi32>
    %c16_i32 = arith.constant 16 : i32
    %35 = vector.broadcast %c16_i32 : i32 to vector<64x17xi32>
    %36 = arith.cmpi eq, %34, %35 : vector<64x17xi32>
    %cst_28 = arith.constant 1.000000e+00 : f32
    %37 = vector.broadcast %cst_28 : f32 to vector<64x17xf32>
    %38 = arith.select %36, %37, %17 : vector<64x17xi1>, vector<64x17xf32>
    %cst_29 = arith.constant dense<0.000000e+00> : vector<64x17xf32>
    %39 = tpu.matmul %33, %38, %cst_29 {dimension_numbers = #tpu.dot_dimension_numbers<[1], [0], [0], [1], [0, 0, 1, 1], [], []>} : vector<64x64xf32>, vector<64x17xf32>, vector<64x17xf32> -> vector<64x17xf32>
    %40 = vector.extract_strided_slice %39 {offsets = [0, 16], sizes = [64, 1], strides = [1, 1]} : vector<64x17xf32> to vector<64x1xf32>
    %41 = vector.extract_strided_slice %39 {offsets = [0, 0], sizes = [64, 16], strides = [1, 1]} : vector<64x17xf32> to vector<64x16xf32>
    %42 = vector.broadcast %40 : vector<64x1xf32> to vector<64x16xf32>
    %43 = arith.divf %41, %42 : vector<64x16xf32>
    %44 = vector.broadcast %2 : vector<1x16xf32> to vector<64x16xf32>
    %45 = arith.addf %43, %44 : vector<64x16xf32>
    %cst_30 = arith.constant 0.000000e+00 : f32
    %46 = vector.broadcast %cst_30 : f32 to vector<64x16xf32>
    %47 = arith.maximumf %45, %46 : vector<64x16xf32>
    %cst_31 = arith.constant dense<0.000000e+00> : vector<64x17xf32>
    %48 = tpu.matmul %47, %3, %cst_31 {dimension_numbers = #tpu.dot_dimension_numbers<[1], [0], [0], [1], [0, 0, 1, 1], [], []>} : vector<64x16xf32>, vector<16x17xf32>, vector<64x17xf32> -> vector<64x17xf32>
    %49 = vector.extract_strided_slice %48 {offsets = [0, 16], sizes = [64, 1], strides = [1, 1]} : vector<64x17xf32> to vector<64x1xf32>
    %cst_32 = arith.constant dense<0.000000e+00> : vector<1x64xf32>
    %50 = tpu.matmul %4, %48, %cst_32 {dimension_numbers = #tpu.dot_dimension_numbers<[1], [1], [0], [0], [0, 0, 1, 0], [], []>} : vector<1x17xf32>, vector<64x17xf32>, vector<1x64xf32> -> vector<1x64xf32>
    %51 = vector.broadcast %49 : vector<64x1xf32> to vector<64x64xf32>
    %52 = vector.broadcast %50 : vector<1x64xf32> to vector<64x64xf32>
    %53 = arith.addf %51, %52 : vector<64x64xf32>
    %cst_33 = arith.constant 0.000000e+00 : f32
    %54 = vector.broadcast %cst_33 : f32 to vector<64x64xf32>
    %55 = arith.cmpf ogt, %53, %54 : vector<64x64xf32>
    %cst_34 = arith.constant 2.000000e-01 : f32
    %56 = vector.broadcast %cst_34 : f32 to vector<64x64xf32>
    %57 = arith.mulf %56, %53 : vector<64x64xf32>
    %58 = arith.select %55, %53, %57 : vector<64x64xi1>, vector<64x64xf32>
    %59 = arith.addf %58, %16 : vector<64x64xf32>
    %cst_35 = arith.constant dense<0xFF800000> : vector<64xf32>
    %60 = vector.multi_reduction <maximumf>, %59, %cst_35 [1] : vector<64x64xf32> to vector<64xf32>
    %61 = vector.shape_cast %60 : vector<64xf32> to vector<64x1xf32>
    %62 = vector.broadcast %61 : vector<64x1xf32> to vector<64x64xf32>
    %63 = arith.subf %59, %62 : vector<64x64xf32>
    %64 = math.exp %63 : vector<64x64xf32>
    %65 = tpu.iota {dimensions = array<i32: 1>} : vector<64x17xi32>
    %c16_i32_36 = arith.constant 16 : i32
    %66 = vector.broadcast %c16_i32_36 : i32 to vector<64x17xi32>
    %67 = arith.cmpi eq, %65, %66 : vector<64x17xi32>
    %cst_37 = arith.constant 1.000000e+00 : f32
    %68 = vector.broadcast %cst_37 : f32 to vector<64x17xf32>
    %69 = arith.select %67, %68, %48 : vector<64x17xi1>, vector<64x17xf32>
    %cst_38 = arith.constant dense<0.000000e+00> : vector<64x17xf32>
    %70 = tpu.matmul %64, %69, %cst_38 {dimension_numbers = #tpu.dot_dimension_numbers<[1], [0], [0], [1], [0, 0, 1, 1], [], []>} : vector<64x64xf32>, vector<64x17xf32>, vector<64x17xf32> -> vector<64x17xf32>
    %71 = vector.extract_strided_slice %70 {offsets = [0, 16], sizes = [64, 1], strides = [1, 1]} : vector<64x17xf32> to vector<64x1xf32>
    %72 = vector.extract_strided_slice %70 {offsets = [0, 0], sizes = [64, 16], strides = [1, 1]} : vector<64x17xf32> to vector<64x16xf32>
    %73 = vector.broadcast %71 : vector<64x1xf32> to vector<64x16xf32>
    %74 = arith.divf %72, %73 : vector<64x16xf32>
    %75 = vector.broadcast %5 : vector<1x16xf32> to vector<64x16xf32>
    %76 = arith.addf %74, %75 : vector<64x16xf32>
    %cst_39 = arith.constant 0.000000e+00 : f32
    %77 = vector.broadcast %cst_39 : f32 to vector<64x16xf32>
    %78 = arith.maximumf %76, %77 : vector<64x16xf32>
    %c0_40 = arith.constant 0 : index
    %c0_41 = arith.constant 0 : index
    %c0_42 = arith.constant 0 : index
    %79 = vector.load %arg15[%c0_40, %c0_41, %c0_42] : memref<2x64x16xf32, #tpu.memory_space<vmem>>, vector<1x64x16xf32>
    %80 = vector.shape_cast %79 : vector<1x64x16xf32> to vector<64x16xf32>
    %81 = vector.shape_cast %78 : vector<64x16xf32> to vector<1x64x16xf32>
    tpu.vector_store %arg15[%c0_40, %c0_41, %c0_42], %81 {strides = array<i32>} : memref<2x64x16xf32, #tpu.memory_space<vmem>>, vector<1x64x16xf32>,
    %cst_43 = arith.constant dense<0.000000e+00> : vector<1x64xf32>
    %82 = tpu.matmul %6, %78, %cst_43 {dimension_numbers = #tpu.dot_dimension_numbers<[1], [1], [0], [0], [0, 0, 1, 0], [], []>} : vector<1x16xf32>, vector<64x16xf32>, vector<1x64xf32> -> vector<1x64xf32>
    %83 = vector.broadcast %7 : vector<1x1xf32> to vector<1x64xf32>
    %84 = arith.addf %82, %83 : vector<1x64xf32>
    %c0_44 = arith.constant 0 : index
    %c0_45 = arith.constant 0 : index
    %c0_46 = arith.constant 0 : index
    %85 = vector.load %arg3[%c0_44, %c0_45, %c0_46] : memref<2x1x64xf32, #tpu.memory_space<vmem>>, vector<1x1x64xf32>
    %86 = vector.shape_cast %85 : vector<1x1x64xf32> to vector<1x64xf32>
    %cst_47 = arith.constant 0.000000e+00 : f32
    %87 = vector.broadcast %cst_47 : f32 to vector<1x64xf32>
    %88 = arith.cmpf oeq, %86, %87 : vector<1x64xf32>
    %cst_48 = arith.constant -1.000000e+09 : f32
    %cst_49 = arith.constant 0.000000e+00 : f32
    %89 = vector.broadcast %cst_48 : f32 to vector<1x64xf32>
    %90 = vector.broadcast %cst_49 : f32 to vector<1x64xf32>
    %91 = arith.select %88, %89, %90 : vector<1x64xi1>, vector<1x64xf32>
    %92 = arith.addf %84, %91 : vector<1x64xf32>
    %cst_50 = arith.constant dense<0xFF800000> : vector<1xf32>
    %93 = vector.multi_reduction <maximumf>, %92, %cst_50 [1] : vector<1x64xf32> to vector<1xf32>
    %94 = vector.shape_cast %93 : vector<1xf32> to vector<1x1xf32>
    %95 = vector.broadcast %94 : vector<1x1xf32> to vector<1x64xf32>
    %96 = arith.subf %92, %95 : vector<1x64xf32>
    %97 = math.exp %96 : vector<1x64xf32>
    %cst_51 = arith.constant dense<0.000000e+00> : vector<1xf32>
    %98 = vector.multi_reduction <add>, %97, %cst_51 [1] : vector<1x64xf32> to vector<1xf32>
    %99 = vector.shape_cast %98 : vector<1xf32> to vector<1x1xf32>
    %100 = vector.broadcast %99 : vector<1x1xf32> to vector<1x64xf32>
    %101 = arith.divf %97, %100 : vector<1x64xf32>
    %c0_52 = arith.constant 0 : index
    %c0_53 = arith.constant 0 : index
    %c0_54 = arith.constant 0 : index
    %102 = vector.load %arg14[%c0_52, %c0_53, %c0_54] : memref<2x1x64xf32, #tpu.memory_space<vmem>>, vector<1x1x64xf32>
    %103 = vector.shape_cast %102 : vector<1x1x64xf32> to vector<1x64xf32>
    %104 = vector.shape_cast %101 : vector<1x64xf32> to vector<1x1x64xf32>
    tpu.vector_store %arg14[%c0_52, %c0_53, %c0_54], %104 {strides = array<i32>} : memref<2x1x64xf32, #tpu.memory_space<vmem>>, vector<1x1x64xf32>,
    %105 = vector.broadcast %94 : vector<1x1xf32> to vector<1x64xf32>
    %106 = arith.subf %92, %105 : vector<1x64xf32>
    %107 = math.log %99 : vector<1x1xf32>
    %108 = vector.broadcast %107 : vector<1x1xf32> to vector<1x64xf32>
    %109 = arith.subf %106, %108 : vector<1x64xf32>
    %cst_55 = arith.constant -23.0258503 : f32
    %cst_56 = arith.constant 0.000000e+00 : f32
    %110 = vector.broadcast %cst_55 : f32 to vector<1x64xf32>
    %111 = arith.maximumf %110, %109 : vector<1x64xf32>
    %112 = vector.broadcast %cst_56 : f32 to vector<1x64xf32>
    %113 = arith.minimumf %112, %111 : vector<1x64xf32>
    %cst_57 = arith.constant 0.000000e+00 : f32
    %114 = vector.broadcast %cst_57 : f32 to vector<1x64xf32>
    %115 = arith.subf %114, %113 : vector<1x64xf32>
    %c0_58 = arith.constant 0 : index
    %c0_59 = arith.constant 0 : index
    %c0_60 = arith.constant 0 : index
    %116 = vector.load %arg4[%c0_58, %c0_59, %c0_60] : memref<2x1x64xf32, #tpu.memory_space<vmem>>, vector<1x1x64xf32>
    %117 = vector.shape_cast %116 : vector<1x1x64xf32> to vector<1x64xf32>
    %118 = arith.mulf %115, %117 : vector<1x64xf32>
    %cst_61 = arith.constant dense<0.000000e+00> : vector<1xf32>
    %119 = vector.multi_reduction <add>, %118, %cst_61 [1] : vector<1x64xf32> to vector<1xf32>
    %120 = vector.shape_cast %119 : vector<1xf32> to vector<1x1xf32>
    %c0_62 = arith.constant 0 : index
    %c0_63 = arith.constant 0 : index
    %c0_64 = arith.constant 0 : index
    %121 = vector.load %arg13[%c0_62, %c0_63, %c0_64] : memref<2x1x1xf32, #tpu.memory_space<vmem>>, vector<1x1x1xf32>
    %122 = vector.shape_cast %121 : vector<1x1x1xf32> to vector<1x1xf32>
    %123 = vector.shape_cast %120 : vector<1x1xf32> to vector<1x1x1xf32>
    tpu.vector_store %arg13[%c0_62, %c0_63, %c0_64], %123 {strides = array<i32>} : memref<2x1x1xf32, #tpu.memory_space<vmem>>, vector<1x1x1xf32>,
    %c1 = arith.constant 1 : index
    %c0_65 = arith.constant 0 : index
    %c0_66 = arith.constant 0 : index
    %124 = vector.load %arg1[%c1, %c0_65, %c0_66] : memref<2x64x16xf32, #tpu.memory_space<vmem>>, vector<1x64x16xf32>
    %125 = vector.shape_cast %124 : vector<1x64x16xf32> to vector<64x16xf32>
    %c1_67 = arith.constant 1 : index
    %c0_68 = arith.constant 0 : index
    %c0_69 = arith.constant 0 : index
    %126 = vector.load %arg2[%c1_67, %c0_68, %c0_69] : memref<2x64x64xf32, #tpu.memory_space<vmem>>, vector<1x64x64xf32>
    %127 = vector.shape_cast %126 : vector<1x64x64xf32> to vector<64x64xf32>
    %cst_70 = arith.constant 0.000000e+00 : f32
    %128 = vector.broadcast %cst_70 : f32 to vector<64x64xf32>
    %129 = arith.cmpf ogt, %127, %128 : vector<64x64xf32>
    %cst_71 = arith.constant 0.000000e+00 : f32
    %cst_72 = arith.constant -1.000000e+30 : f32
    %130 = vector.broadcast %cst_71 : f32 to vector<64x64xf32>
    %131 = vector.broadcast %cst_72 : f32 to vector<64x64xf32>
    %132 = arith.select %129, %130, %131 : vector<64x64xi1>, vector<64x64xf32>
    %cst_73 = arith.constant dense<0.000000e+00> : vector<64x17xf32>
    %133 = tpu.matmul %125, %0, %cst_73 {dimension_numbers = #tpu.dot_dimension_numbers<[1], [0], [0], [1], [0, 0, 1, 1], [], []>} : vector<64x16xf32>, vector<16x17xf32>, vector<64x17xf32> -> vector<64x17xf32>
    %134 = vector.extract_strided_slice %133 {offsets = [0, 16], sizes = [64, 1], strides = [1, 1]} : vector<64x17xf32> to vector<64x1xf32>
    %cst_74 = arith.constant dense<0.000000e+00> : vector<1x64xf32>
    %135 = tpu.matmul %1, %133, %cst_74 {dimension_numbers = #tpu.dot_dimension_numbers<[1], [1], [0], [0], [0, 0, 1, 0], [], []>} : vector<1x17xf32>, vector<64x17xf32>, vector<1x64xf32> -> vector<1x64xf32>
    %136 = vector.broadcast %134 : vector<64x1xf32> to vector<64x64xf32>
    %137 = vector.broadcast %135 : vector<1x64xf32> to vector<64x64xf32>
    %138 = arith.addf %136, %137 : vector<64x64xf32>
    %cst_75 = arith.constant 0.000000e+00 : f32
    %139 = vector.broadcast %cst_75 : f32 to vector<64x64xf32>
    %140 = arith.cmpf ogt, %138, %139 : vector<64x64xf32>
    %cst_76 = arith.constant 2.000000e-01 : f32
    %141 = vector.broadcast %cst_76 : f32 to vector<64x64xf32>
    %142 = arith.mulf %141, %138 : vector<64x64xf32>
    %143 = arith.select %140, %138, %142 : vector<64x64xi1>, vector<64x64xf32>
    %144 = arith.addf %143, %132 : vector<64x64xf32>
    %cst_77 = arith.constant dense<0xFF800000> : vector<64xf32>
    %145 = vector.multi_reduction <maximumf>, %144, %cst_77 [1] : vector<64x64xf32> to vector<64xf32>
    %146 = vector.shape_cast %145 : vector<64xf32> to vector<64x1xf32>
    %147 = vector.broadcast %146 : vector<64x1xf32> to vector<64x64xf32>
    %148 = arith.subf %144, %147 : vector<64x64xf32>
    %149 = math.exp %148 : vector<64x64xf32>
    %150 = tpu.iota {dimensions = array<i32: 1>} : vector<64x17xi32>
    %c16_i32_78 = arith.constant 16 : i32
    %151 = vector.broadcast %c16_i32_78 : i32 to vector<64x17xi32>
    %152 = arith.cmpi eq, %150, %151 : vector<64x17xi32>
    %cst_79 = arith.constant 1.000000e+00 : f32
    %153 = vector.broadcast %cst_79 : f32 to vector<64x17xf32>
    %154 = arith.select %152, %153, %133 : vector<64x17xi1>, vector<64x17xf32>
    %cst_80 = arith.constant dense<0.000000e+00> : vector<64x17xf32>
    %155 = tpu.matmul %149, %154, %cst_80 {dimension_numbers = #tpu.dot_dimension_numbers<[1], [0], [0], [1], [0, 0, 1, 1], [], []>} : vector<64x64xf32>, vector<64x17xf32>, vector<64x17xf32> -> vector<64x17xf32>
    %156 = vector.extract_strided_slice %155 {offsets = [0, 16], sizes = [64, 1], strides = [1, 1]} : vector<64x17xf32> to vector<64x1xf32>
    %157 = vector.extract_strided_slice %155 {offsets = [0, 0], sizes = [64, 16], strides = [1, 1]} : vector<64x17xf32> to vector<64x16xf32>
    %158 = vector.broadcast %156 : vector<64x1xf32> to vector<64x16xf32>
    %159 = arith.divf %157, %158 : vector<64x16xf32>
    %160 = vector.broadcast %2 : vector<1x16xf32> to vector<64x16xf32>
    %161 = arith.addf %159, %160 : vector<64x16xf32>
    %cst_81 = arith.constant 0.000000e+00 : f32
    %162 = vector.broadcast %cst_81 : f32 to vector<64x16xf32>
    %163 = arith.maximumf %161, %162 : vector<64x16xf32>
    %cst_82 = arith.constant dense<0.000000e+00> : vector<64x17xf32>
    %164 = tpu.matmul %163, %3, %cst_82 {dimension_numbers = #tpu.dot_dimension_numbers<[1], [0], [0], [1], [0, 0, 1, 1], [], []>} : vector<64x16xf32>, vector<16x17xf32>, vector<64x17xf32> -> vector<64x17xf32>
    %165 = vector.extract_strided_slice %164 {offsets = [0, 16], sizes = [64, 1], strides = [1, 1]} : vector<64x17xf32> to vector<64x1xf32>
    %cst_83 = arith.constant dense<0.000000e+00> : vector<1x64xf32>
    %166 = tpu.matmul %4, %164, %cst_83 {dimension_numbers = #tpu.dot_dimension_numbers<[1], [1], [0], [0], [0, 0, 1, 0], [], []>} : vector<1x17xf32>, vector<64x17xf32>, vector<1x64xf32> -> vector<1x64xf32>
    %167 = vector.broadcast %165 : vector<64x1xf32> to vector<64x64xf32>
    %168 = vector.broadcast %166 : vector<1x64xf32> to vector<64x64xf32>
    %169 = arith.addf %167, %168 : vector<64x64xf32>
    %cst_84 = arith.constant 0.000000e+00 : f32
    %170 = vector.broadcast %cst_84 : f32 to vector<64x64xf32>
    %171 = arith.cmpf ogt, %169, %170 : vector<64x64xf32>
    %cst_85 = arith.constant 2.000000e-01 : f32
    %172 = vector.broadcast %cst_85 : f32 to vector<64x64xf32>
    %173 = arith.mulf %172, %169 : vector<64x64xf32>
    %174 = arith.select %171, %169, %173 : vector<64x64xi1>, vector<64x64xf32>
    %175 = arith.addf %174, %132 : vector<64x64xf32>
    %cst_86 = arith.constant dense<0xFF800000> : vector<64xf32>
    %176 = vector.multi_reduction <maximumf>, %175, %cst_86 [1] : vector<64x64xf32> to vector<64xf32>
    %177 = vector.shape_cast %176 : vector<64xf32> to vector<64x1xf32>
    %178 = vector.broadcast %177 : vector<64x1xf32> to vector<64x64xf32>
    %179 = arith.subf %175, %178 : vector<64x64xf32>
    %180 = math.exp %179 : vector<64x64xf32>
    %181 = tpu.iota {dimensions = array<i32: 1>} : vector<64x17xi32>
    %c16_i32_87 = arith.constant 16 : i32
    %182 = vector.broadcast %c16_i32_87 : i32 to vector<64x17xi32>
    %183 = arith.cmpi eq, %181, %182 : vector<64x17xi32>
    %cst_88 = arith.constant 1.000000e+00 : f32
    %184 = vector.broadcast %cst_88 : f32 to vector<64x17xf32>
    %185 = arith.select %183, %184, %164 : vector<64x17xi1>, vector<64x17xf32>
    %cst_89 = arith.constant dense<0.000000e+00> : vector<64x17xf32>
    %186 = tpu.matmul %180, %185, %cst_89 {dimension_numbers = #tpu.dot_dimension_numbers<[1], [0], [0], [1], [0, 0, 1, 1], [], []>} : vector<64x64xf32>, vector<64x17xf32>, vector<64x17xf32> -> vector<64x17xf32>
    %187 = vector.extract_strided_slice %186 {offsets = [0, 16], sizes = [64, 1], strides = [1, 1]} : vector<64x17xf32> to vector<64x1xf32>
    %188 = vector.extract_strided_slice %186 {offsets = [0, 0], sizes = [64, 16], strides = [1, 1]} : vector<64x17xf32> to vector<64x16xf32>
    %189 = vector.broadcast %187 : vector<64x1xf32> to vector<64x16xf32>
    %190 = arith.divf %188, %189 : vector<64x16xf32>
    %191 = vector.broadcast %5 : vector<1x16xf32> to vector<64x16xf32>
    %192 = arith.addf %190, %191 : vector<64x16xf32>
    %cst_90 = arith.constant 0.000000e+00 : f32
    %193 = vector.broadcast %cst_90 : f32 to vector<64x16xf32>
    %194 = arith.maximumf %192, %193 : vector<64x16xf32>
    %c1_91 = arith.constant 1 : index
    %c0_92 = arith.constant 0 : index
    %c0_93 = arith.constant 0 : index
    %195 = vector.load %arg15[%c1_91, %c0_92, %c0_93] : memref<2x64x16xf32, #tpu.memory_space<vmem>>, vector<1x64x16xf32>
    %196 = vector.shape_cast %195 : vector<1x64x16xf32> to vector<64x16xf32>
    %197 = vector.shape_cast %194 : vector<64x16xf32> to vector<1x64x16xf32>
    tpu.vector_store %arg15[%c1_91, %c0_92, %c0_93], %197 {strides = array<i32>} : memref<2x64x16xf32, #tpu.memory_space<vmem>>, vector<1x64x16xf32>,
    %cst_94 = arith.constant dense<0.000000e+00> : vector<1x64xf32>
    %198 = tpu.matmul %6, %194, %cst_94 {dimension_numbers = #tpu.dot_dimension_numbers<[1], [1], [0], [0], [0, 0, 1, 0], [], []>} : vector<1x16xf32>, vector<64x16xf32>, vector<1x64xf32> -> vector<1x64xf32>
    %199 = vector.broadcast %7 : vector<1x1xf32> to vector<1x64xf32>
    %200 = arith.addf %198, %199 : vector<1x64xf32>
    %c1_95 = arith.constant 1 : index
    %c0_96 = arith.constant 0 : index
    %c0_97 = arith.constant 0 : index
    %201 = vector.load %arg3[%c1_95, %c0_96, %c0_97] : memref<2x1x64xf32, #tpu.memory_space<vmem>>, vector<1x1x64xf32>
    %202 = vector.shape_cast %201 : vector<1x1x64xf32> to vector<1x64xf32>
    %cst_98 = arith.constant 0.000000e+00 : f32
    %203 = vector.broadcast %cst_98 : f32 to vector<1x64xf32>
    %204 = arith.cmpf oeq, %202, %203 : vector<1x64xf32>
    %cst_99 = arith.constant -1.000000e+09 : f32
    %cst_100 = arith.constant 0.000000e+00 : f32
    %205 = vector.broadcast %cst_99 : f32 to vector<1x64xf32>
    %206 = vector.broadcast %cst_100 : f32 to vector<1x64xf32>
    %207 = arith.select %204, %205, %206 : vector<1x64xi1>, vector<1x64xf32>
    %208 = arith.addf %200, %207 : vector<1x64xf32>
    %cst_101 = arith.constant dense<0xFF800000> : vector<1xf32>
    %209 = vector.multi_reduction <maximumf>, %208, %cst_101 [1] : vector<1x64xf32> to vector<1xf32>
    %210 = vector.shape_cast %209 : vector<1xf32> to vector<1x1xf32>
    %211 = vector.broadcast %210 : vector<1x1xf32> to vector<1x64xf32>
    %212 = arith.subf %208, %211 : vector<1x64xf32>
    %213 = math.exp %212 : vector<1x64xf32>
    %cst_102 = arith.constant dense<0.000000e+00> : vector<1xf32>
    %214 = vector.multi_reduction <add>, %213, %cst_102 [1] : vector<1x64xf32> to vector<1xf32>
    %215 = vector.shape_cast %214 : vector<1xf32> to vector<1x1xf32>
    %216 = vector.broadcast %215 : vector<1x1xf32> to vector<1x64xf32>
    %217 = arith.divf %213, %216 : vector<1x64xf32>
    %c1_103 = arith.constant 1 : index
    %c0_104 = arith.constant 0 : index
    %c0_105 = arith.constant 0 : index
    %218 = vector.load %arg14[%c1_103, %c0_104, %c0_105] : memref<2x1x64xf32, #tpu.memory_space<vmem>>, vector<1x1x64xf32>
    %219 = vector.shape_cast %218 : vector<1x1x64xf32> to vector<1x64xf32>
    %220 = vector.shape_cast %217 : vector<1x64xf32> to vector<1x1x64xf32>
    tpu.vector_store %arg14[%c1_103, %c0_104, %c0_105], %220 {strides = array<i32>} : memref<2x1x64xf32, #tpu.memory_space<vmem>>, vector<1x1x64xf32>,
    %221 = vector.broadcast %210 : vector<1x1xf32> to vector<1x64xf32>
    %222 = arith.subf %208, %221 : vector<1x64xf32>
    %223 = math.log %215 : vector<1x1xf32>
    %224 = vector.broadcast %223 : vector<1x1xf32> to vector<1x64xf32>
    %225 = arith.subf %222, %224 : vector<1x64xf32>
    %cst_106 = arith.constant -23.0258503 : f32
    %cst_107 = arith.constant 0.000000e+00 : f32
    %226 = vector.broadcast %cst_106 : f32 to vector<1x64xf32>
    %227 = arith.maximumf %226, %225 : vector<1x64xf32>
    %228 = vector.broadcast %cst_107 : f32 to vector<1x64xf32>
    %229 = arith.minimumf %228, %227 : vector<1x64xf32>
    %cst_108 = arith.constant 0.000000e+00 : f32
    %230 = vector.broadcast %cst_108 : f32 to vector<1x64xf32>
    %231 = arith.subf %230, %229 : vector<1x64xf32>
    %c1_109 = arith.constant 1 : index
    %c0_110 = arith.constant 0 : index
    %c0_111 = arith.constant 0 : index
    %232 = vector.load %arg4[%c1_109, %c0_110, %c0_111] : memref<2x1x64xf32, #tpu.memory_space<vmem>>, vector<1x1x64xf32>
    %233 = vector.shape_cast %232 : vector<1x1x64xf32> to vector<1x64xf32>
    %234 = arith.mulf %231, %233 : vector<1x64xf32>
    %cst_112 = arith.constant dense<0.000000e+00> : vector<1xf32>
    %235 = vector.multi_reduction <add>, %234, %cst_112 [1] : vector<1x64xf32> to vector<1xf32>
    %236 = vector.shape_cast %235 : vector<1xf32> to vector<1x1xf32>
    %c1_113 = arith.constant 1 : index
    %c0_114 = arith.constant 0 : index
    %c0_115 = arith.constant 0 : index
    %237 = vector.load %arg13[%c1_113, %c0_114, %c0_115] : memref<2x1x1xf32, #tpu.memory_space<vmem>>, vector<1x1x1xf32>
    %238 = vector.shape_cast %237 : vector<1x1x1xf32> to vector<1x1xf32>
    %239 = vector.shape_cast %236 : vector<1x1xf32> to vector<1x1x1xf32>
    tpu.vector_store %arg13[%c1_113, %c0_114, %c0_115], %239 {strides = array<i32>} : memref<2x1x1xf32, #tpu.memory_space<vmem>>, vector<1x1x1xf32>,
    return
  }
  func.func @transform_0(%arg0: i32) -> (i32, i32, i32) {
    %c0_i32 = arith.constant 0 : i32
    %c0_i32_0 = arith.constant 0 : i32
    %c0_i32_1 = arith.constant 0 : i32
    return %arg0, %c0_i32, %c0_i32_0 : i32, i32, i32
  }
  func.func @transform_1(%arg0: i32) -> (i32, i32, i32) {
    %c0_i32 = arith.constant 0 : i32
    %c0_i32_0 = arith.constant 0 : i32
    %c0_i32_1 = arith.constant 0 : i32
    return %arg0, %c0_i32, %c0_i32_0 : i32, i32, i32
  }
  func.func @transform_2(%arg0: i32) -> (i32, i32, i32) {
    %c0_i32 = arith.constant 0 : i32
    %c0_i32_0 = arith.constant 0 : i32
    %c0_i32_1 = arith.constant 0 : i32
    return %arg0, %c0_i32, %c0_i32_0 : i32, i32, i32
  }
  func.func @transform_3(%arg0: i32) -> (i32, i32, i32) {
    %c0_i32 = arith.constant 0 : i32
    %c0_i32_0 = arith.constant 0 : i32
    %c0_i32_1 = arith.constant 0 : i32
    return %arg0, %c0_i32, %c0_i32_0 : i32, i32, i32
  }
  func.func @transform_4(%arg0: i32) -> (i32, i32) {
    %c0_i32 = arith.constant 0 : i32
    %c0_i32_0 = arith.constant 0 : i32
    %c0_i32_1 = arith.constant 0 : i32
    return %c0_i32, %c0_i32_0 : i32, i32
  }
  func.func @transform_5(%arg0: i32) -> (i32, i32) {
    %c0_i32 = arith.constant 0 : i32
    %c0_i32_0 = arith.constant 0 : i32
    %c0_i32_1 = arith.constant 0 : i32
    return %c0_i32, %c0_i32_0 : i32, i32
  }
  func.func @transform_6(%arg0: i32) -> (i32, i32) {
    %c0_i32 = arith.constant 0 : i32
    %c0_i32_0 = arith.constant 0 : i32
    %c0_i32_1 = arith.constant 0 : i32
    return %c0_i32, %c0_i32_0 : i32, i32
  }
  func.func @transform_7(%arg0: i32) -> (i32, i32) {
    %c0_i32 = arith.constant 0 : i32
    %c0_i32_0 = arith.constant 0 : i32
    %c0_i32_1 = arith.constant 0 : i32
    return %c0_i32, %c0_i32_0 : i32, i32
  }
  func.func @transform_8(%arg0: i32) -> (i32, i32) {
    %c0_i32 = arith.constant 0 : i32
    %c0_i32_0 = arith.constant 0 : i32
    %c0_i32_1 = arith.constant 0 : i32
    return %c0_i32, %c0_i32_0 : i32, i32
  }
  func.func @transform_9(%arg0: i32) -> (i32, i32) {
    %c0_i32 = arith.constant 0 : i32
    %c0_i32_0 = arith.constant 0 : i32
    %c0_i32_1 = arith.constant 0 : i32
    return %c0_i32, %c0_i32_0 : i32, i32
  }
  func.func @transform_10(%arg0: i32) -> (i32, i32) {
    %c0_i32 = arith.constant 0 : i32
    %c0_i32_0 = arith.constant 0 : i32
    %c0_i32_1 = arith.constant 0 : i32
    return %c0_i32, %c0_i32_0 : i32, i32
  }
  func.func @transform_11(%arg0: i32) -> (i32, i32) {
    %c0_i32 = arith.constant 0 : i32
    %c0_i32_0 = arith.constant 0 : i32
    %c0_i32_1 = arith.constant 0 : i32
    return %c0_i32, %c0_i32_0 : i32, i32
  }
  func.func @transform_12(%arg0: i32) -> (i32, i32, i32) {
    %c0_i32 = arith.constant 0 : i32
    %c0_i32_0 = arith.constant 0 : i32
    %c0_i32_1 = arith.constant 0 : i32
    return %arg0, %c0_i32, %c0_i32_0 : i32, i32, i32
  }
  func.func @transform_13(%arg0: i32) -> (i32, i32, i32) {
    %c0_i32 = arith.constant 0 : i32
    %c0_i32_0 = arith.constant 0 : i32
    %c0_i32_1 = arith.constant 0 : i32
    return %arg0, %c0_i32, %c0_i32_0 : i32, i32, i32
  }
  func.func @transform_14(%arg0: i32) -> (i32, i32, i32) {
    %c0_i32 = arith.constant 0 : i32
    %c0_i32_0 = arith.constant 0 : i32
    %c0_i32_1 = arith.constant 0 : i32
    return %arg0, %c0_i32, %c0_i32_0 : i32, i32, i32
  }
}

</mosaic_0001>

<bundles_post_ra>
// kernel: nl_encoder_forward.1
= control target key start
LH: loop header
LB: loop body
LE: loop exit
PB: predicated region body
PF: predicated region fallthrough
CT: control target
= control target key end

     0   :  { %s5139_s0 = inlined_call_operand.vmem [shape: f32[4,64,16], index: 0, kind: input, shape index: {}]   ;;  %s5140_s1 = inlined_call_operand.vmem [shape: f32[4,64,64], index: 1, kind: input, shape index: {}]   ;;  %s5141_s2 = inlined_call_operand.vmem [shape: f32[4,1,64], index: 2, kind: input, shape index: {}]   ;;  %s5142_s3 = inlined_call_operand.vmem [shape: f32[4,1,64], index: 3, kind: input, shape index: {}]   ;;  %s5143_s4 = inlined_call_operand.vmem [shape: f32[16,17], index: 4, kind: input, shape index: {}]   ;;  %s5144_s5 = inlined_call_operand.vmem [shape: f32[1,17], index: 5, kind: input, shape index: {}]   ;;  %s5145_s6 = inlined_call_operand.vmem [shape: f32[1,16], index: 6, kind: input, shape index: {}]   ;;  %s5146_s7 = inlined_call_operand.vmem [shape: f32[16,17], index: 7, kind: input, shape index: {}]   ;;  %s5147_s8 = inlined_call_operand.vmem [shape: f32[1,17], index: 8, kind: input, shape index: {}]   ;;  %s5148_s9 = inlined_call_operand.vmem [shape: f32[1,16], index: 9, kind: input, shape index: {}]   ;;  %s5149_s10 = inlined_call_operand.vmem [shape: f32[1,16], index: 10, kind: input, shape index: {}]   ;;  %s5150_s11 = inlined_call_operand.<no memory space> [shape: f32[1,1], index: 11, kind: input, shape index: {}]   ;;  %s5151_s12 = inlined_call_operand.vmem [shape: f32[4,1,1], index: 12, kind: output, shape index: {0}]   ;;  %s5152_s13 = inlined_call_operand.hbm [shape: f32[4,1,64], index: 13, kind: output, shape index: {1}]   ;;  %s5153_s14 = inlined_call_operand.vmem [shape: f32[4,64,16], index: 14, kind: output, shape index: {2}]  }
   0x1   :  { %5154 = sst [smem:[#allocation6_spill]] %s5139_s0  ;;  %v20_v0 = vstv %s5150_s11 }
   0x2   :  { %5155 = sst [smem:[#allocation7_spill]] %s5140_s1  ;;  %21 = vst [vmem:[#allocation2] sm:$0x1] %v20_v0 }
   0x3   :  { %5156 = sst [smem:[#allocation8_spill]] %s5141_s2 }
   0x4   :  { %22 = vsyncpa [#allocation4], 0 }
   0x5   :  { %24 = vsyncpa [#allocation4 + $0x1], 0  ;;  %s4482_s15 = smov 0   ;;  %s4484_s16 = smov 0  }
   0x6   :  { %s4486_s17 = smov 0   ;;  %s4488_s18 = smov 0  }
   0x7 LB: > { %s4503_s11 = sadd.s32 4294967295, %s4393_s18   ;;  %s3337_s19 = sadd.s32 4294967294, %s4393_s18   ;;  %s4393_s18 = sphi %s4488_s18, %s5169_s18   ;;  %s4389_s17 = sphi %s4486_s17, %s5168_s17   ;;  %s4385_s16 = sphi %s4484_s16, %s5167_s16   ;;  %s4381_s15 = sphi %s4482_s15, %s5166_s15  }
   0x8   : > { %s4507_s20 = sadd.s32 1, %s4393_s18   ;;  %s335_s21 = sadd.s32 1, %s4389_s17 }
   0x9   : > { %s332_s22 = ssub.s32 %s4393_s18, %s4507_s20  ;;  %p345_p0 = scmp.ne.s32.totalorder %s4389_s17, %s4385_s16 }
   0xa   : > { %p333_p1 = scmp.eq.s32.totalorder %s332_s22, 0  ;;  %p346_p2 = scmp.eq.s32.totalorder %s4503_s11, 1 }
   0xb   : > { %p351_p3 = scmp.ne.s32.totalorder %s4385_s16, %s4381_s15  ;;  %p352_p4 = scmp.eq.s32.totalorder %s3337_s19, 1 }
   0xc   : > { %s4518_s23 = scalar_select %p333_p1, %s4389_s17, %s335_s21  }
   0xd   : > { %p4520_p5 = por %p346_p2, %p345_p0  ;;  %p4524_p6 = por %p352_p4, %p351_p3 }
   0xe   : > { %p3340_p7 = scmp.ge.s32.totalorder %s4393_s18, 1  ;;  %p456_p8 = scmp.lt.s32.totalorder %s4393_s18, 3 }
  0x10   : > { %p457_p9 = pnand %p3340_p7, %p456_p8 }
  0x11   : > { %v564_v1 = vld [vmem:[%s5143_s4] sm:$0xff] (!%p457_p9)  ;;  %v565_v2 = vld [vmem:[%s5143_s4 + $0x8] sm:$0xff] (!%p457_p9)  ;;  %s3342_s30 = sshll.u32 (!%p457_p9), %s4503_s11, 1  ;;  %vm606_vm0 = vcmask (!%p457_p9), 130048   ;;  %s5159_s0 = sld [smem:[#allocation6_spill]] (!%p457_p9)  ;;  %v4395_v12 = vmov (!%p457_p9), 16   ;;  %v866_v15 = vlaneseq (!%p457_p9) }
  0x12   : > { %460 = sbr.rel (%p457_p9) target bundleno = 4733 (0x127d), region = 68  ;;  %v4537_v3 = vpack.c.bf16 (!%p457_p9), %v565_v2, %v564_v1  ;;  %p528_p10 = scmp.lt.s32.totalorder (!%p457_p9), %s3342_s30, 3  ;;  %4182 = vset.pattern.permute.xlu0 (!%p457_p9), %v4395_v12  ;;  %4183 = vset.pattern.permute.xlu1 (!%p457_p9), %v4395_v12  ;;  %v4396_v13 = vmov (!%p457_p9), 0.0|0.0   ;;  %vm4397_vm1 = vmmov (!%p457_p9), 0   ;;  %v4398_v14 = vmov (!%p457_p9), 0.0  }
  0x13   : > { %3963 = vmatprep.subr.bf16.mxu1 (!%p457_p9), %v4396_v13  ;;  %3701 = vmatprep.mubr.msk.f32.mxu1 (!%p457_p9), %vm4397_vm1, %v4398_v14  ;;  %v4573_v16 = vand.u32 (!%p457_p9), 127, %v866_v15  ;;  %vm736_vm3 = vcmask (!%p457_p9), 138240   ;;  %v566_v42 = vld [vmem:[%s5144_s5] sm:$0x1] (!%p457_p9)  ;;  %s5162_s1 = sld [smem:[#allocation7_spill]] (!%p457_p9)  ;;  %v867_v45 = vshrl.u32 (!%p457_p9), %v866_v15, 7 }
  0x14   : > { %3960 = vmatprep.subr.bf16.mxu0 (!%p457_p9), %v4537_v3  ;;  %vm4580_vm4 = vmpackc.low (!%p457_p9), %vm736_vm3, %vm736_vm3  ;;  %v4399_v58 = vmov (!%p457_p9), -1e+30   ;;  %vm910_vm9 = vcmask (!%p457_p9), 523264   ;;  %s5165_s2 = sld [smem:[#allocation8_spill]] (!%p457_p9) }
  0x15   : > { %3962 = vmatpush3.bf16.msra.mxu0 (!%p457_p9), %v4537_v3  ;;  %vm961_vm2 = vcmp.eq.s32.totalorder (!%p457_p9), %v4573_v16, 16  ;;  %v4626_v51 = vsub.s32 (!%p457_p9), 0, %v867_v45  ;;  %v4328_v16 = vld [vmem:[%s5147_s8] sm:$0x1] (!%p457_p9) }
  0x19   : > { %s5171_s30 = smov (!%p528_p10, %s3342_s30), 3 }
  0x1a   : > { %s4544_s19 = sshll.u32 %s5171_s30, 6  ;;  %s5016_s29 = scalar_lea.vmem %s5165_s2, %s5171_s30 }
  0x1b   : > { %s4550_s26 = scalar_lea.vmem %s5159_s0, %s4544_s19  ;;  %s4620_s22 = scalar_lea.vmem %s5162_s1, %s4544_s19 }
  0x1c   : > { %v574_v4 = vld [vmem:[%s4550_s26] sm:$0xff]  ;;  %v575_v5 = vld [vmem:[%s4550_s26 + $0x8] sm:$0xff]  ;;  %v576_v6 = vld [vmem:[%s4550_s26 + $0x10] sm:$0xff]  ;;  %s4774_s0 = scalar_lea.vmem %s5153_s14, %s4544_s19 }
  0x1d   : > { %3673 = vmatprep.mubr.msk.f32.mxu0 %vm606_vm0, %v574_v4  ;;  %v577_v7 = vld [vmem:[%s4550_s26 + $0x18] sm:$0xff]  ;;  %v578_v8 = vld [vmem:[%s4550_s26 + $0x20] sm:$0xff]  ;;  %v579_v9 = vld [vmem:[%s4550_s26 + $0x28] sm:$0xff] }
  0x1e   : > { %3674 = vmatmul.mubr.msk.f32.vlgmr.msra.gmra.mrb[0].mxu0 %vm606_vm0, %v575_v5  ;;  %v580_v10 = vld [vmem:[%s4550_s26 + $0x30] sm:$0xff]  ;;  %v581_v11 = vld [vmem:[%s4550_s26 + $0x38] sm:$0xff]  ;;  %v583_v47 = vld [vmem:[%s4620_s22 + $0x8] sm:$0xff] }
  0x1f   : > { %3676 = vmatprep.mubr.msk.f32.mxu0 %vm606_vm0, %v576_v6  ;;  %v582_v48 = vld [vmem:[%s4620_s22] sm:$0xff]  ;;  %v584_v50 = vld [vmem:[%s4620_s22 + $0x10] sm:$0xff]  ;;  %vm591_vm5 = vcmp.gt.f32.partialorder %v583_v47, 0.0  ;;  %v585_v60 = vld [vmem:[%s4620_s22 + $0x18] sm:$0xff] }
  0x20   : > { %v586_v49 = vld [vmem:[%s4620_s22 + $0x20] sm:$0xff]  ;;  %vm590_vm6 = vcmp.gt.f32.partialorder %v582_v48, 0.0  ;;  %vm592_vm8 = vcmp.gt.f32.partialorder %v584_v50, 0.0  ;;  %v588_v54 = vld [vmem:[%s4620_s22 + $0x30] sm:$0xff]  ;;  %v4631_v59 = vsel %vm591_vm5, 0.0, %v4399_v58  ;;  %vm593_vm11 = vcmp.gt.f32.partialorder %v585_v60, 0.0 }
  0x21   : > { %vm594_vm7 = vcmp.gt.f32.partialorder %v586_v49, 0.0  ;;  %v4635_v61 = vsel %vm590_vm6, 0.0, %v4399_v58  ;;  %v4641_v63 = vsel %vm592_vm8, 0.0, %v4399_v58  ;;  %vm596_vm10 = vcmp.gt.f32.partialorder %v588_v54, 0.0 }
  0x22   : > { %3677 = vmatmul.mubr.msk.f32.gmra.mrb[2].mxu0 %vm606_vm0, %v577_v7  ;;  %v4638_v62 = vsel %vm594_vm7, 0.0, %v4399_v58 }
  0x23   : > { %3679 = vmatprep.mubr.msk.f32.mxu0 %vm606_vm0, %v578_v8 }
  0x26   : > { %3680 = vmatmul.mubr.msk.f32.gmra.mrb[4].mxu0 %vm606_vm0, %v579_v9 }
  0x27   : > { %3682 = vmatprep.mubr.msk.f32.mxu0 %vm606_vm0, %v580_v10 }
  0x2a   : > { %3683 = vmatmul.mubr.msk.f32.gmra.mrb[6].mxu0 %vm606_vm0, %v581_v11 }
  0xf1   : > { %v3675_v17 = vpop.f32.mrb[0].mxu0 }
  0xf2   : > { %v963_v18 = vsel %vm961_vm2, 1.0, %v3675_v17  ;;  %v697_v19 = vpop.f32.mrb[1].mxu0 }
  0xf3   : > { %v3964_v21 = vpack.c.bf16 %v3675_v17, %v697_v19  ;;  %v962_v22 = vsel %vm961_vm2, 1.0, %v697_v19  ;;  %835 = vperm.xlu0 %4182, %v697_v19  }
  0xf4   : > { %v3979_v23 = vpack.c.bf16 %v963_v18, %v962_v22 }
  0xf5   : > { %v3678_v24 = vpop.f32.mrb[2].mxu0  ;;  %3966 = vmatpush3.bf16.xpose.msk.msra.mxu1 %vm4580_vm4, %v3964_v21 }
  0xf6   : > { %v965_v25 = vsel %vm961_vm2, 1.0, %v3678_v24  ;;  %v707_v26 = vpop.f32.mrb[3].mxu0  ;;  %3980 = vmatprep.subr.bf16.mxu0 %v3979_v23  ;;  %3967 = vmatprep.subr.bf16.mxu1 %v4396_v13 }
  0xf7   : > { %v3968_v27 = vpack.c.bf16 %v3678_v24, %v707_v26  ;;  %v964_v28 = vsel %vm961_vm2, 1.0, %v707_v26  ;;  %839 = vperm.xlu0 %4182, %v3675_v17   ;;  %3982 = vmatpush3.bf16.msra.mxu0 %v3979_v23 }
  0xf8   : > { %843 = vperm.xlu1 %4183, %v707_v26   ;;  %v3983_v29 = vpack.c.bf16 %v965_v25, %v964_v28  ;;  %v587_v28 = vld [vmem:[%s4620_s22 + $0x28] sm:$0xff] }
  0xf9   : > { %v3681_v30 = vpop.f32.mrb[4].mxu0  ;;  %vm595_vm7 = vcmp.gt.f32.partialorder %v587_v28, 0.0 }
  0xfa   : > { %3984 = vmatprep.subr.bf16.mxu0 %v3983_v29  ;;  %v967_v31 = vsel %vm961_vm2, 1.0, %v3681_v30  ;;  %v717_v32 = vpop.f32.mrb[5].mxu0 }
  0xfb   : > { %3986 = vmatpush3.bf16.msra.mxu0 %v3983_v29  ;;  %v3972_v33 = vpack.c.bf16 %v3681_v30, %v717_v32  ;;  %v966_v34 = vsel %vm961_vm2, 1.0, %v717_v32  ;;  %851 = vperm.xlu0 %4182, %v717_v32  }
  0xfc   : > { %847 = vperm.xlu1 %4183, %v3678_v24   ;;  %v3987_v35 = vpack.c.bf16 %v967_v31, %v966_v34 }
  0xfd   : > { %3970 = vmatpush3.bf16.xpose.msk.msra.mxu1 %vm4580_vm4, %v3968_v27  ;;  %v3684_v36 = vpop.f32.mrb[6].mxu0  ;;  %v4648_v27 = vsel %vm596_vm10, 0.0, %v4399_v58 }
  0xfe   : > { %3971 = vmatprep.subr.bf16.mxu1 %v4396_v13  ;;  %3988 = vmatprep.subr.bf16.mxu0 %v3987_v35  ;;  %v969_v37 = vsel %vm961_vm2, 1.0, %v3684_v36  ;;  %v727_v38 = vpop.f32.mrb[7].mxu0 }
  0xff   : > { %3990 = vmatpush3.bf16.msra.mxu0 %v3987_v35  ;;  %v3976_v39 = vpack.c.bf16 %v3684_v36, %v727_v38  ;;  %v968_v40 = vsel %vm961_vm2, 1.0, %v727_v38  ;;  %859 = vperm.xlu0 %4182, %v727_v38   ;;  %v4657_v35 = vsel %vm593_vm11, 0.0, %v4399_v58 }
 0x100   : > { %855 = vperm.xlu1 %4183, %v3681_v30   ;;  %v3991_v41 = vpack.c.bf16 %v969_v37, %v968_v40 }
 0x102   : > { %3992 = vmatprep.subr.bf16.mxu0 %v3991_v41 }
 0x103   : > { %3994 = vmatpush3.bf16.msra.mxu0 %v3991_v41 }
 0x104   : > { %863 = vperm.xlu1 %4183, %v3684_v36  }
 0x105   : > { %3974 = vmatpush3.bf16.xpose.msk.msra.mxu1 %vm4580_vm4, %v3972_v33 }
 0x106   : > { %3975 = vmatprep.subr.bf16.mxu1 %v4396_v13 }
 0x10d   : > { %3978 = vmatpush3.bf16.xpose.msk.msra.mxu1 %vm4580_vm4, %v3976_v39  ;;  %v589_v39 = vld [vmem:[%s4620_s22 + $0x38] sm:$0xff] }
 0x10e   : > { %3999 = vmatprep.subr.bf16.mxu1 %v4396_v13  ;;  %vm597_vm10 = vcmp.gt.f32.partialorder %v589_v39, 0.0 }
 0x10f   : > { %v4671_v50 = vsel %vm597_vm10, 0.0, %v4399_v58  ;;  %vm4780_vm10 = vmpackc.low %vm606_vm0, %vm606_vm0 }
 0x114   : > { %3702 = vmatmul.mubr.msk.f32.vlgmr.msra.gmra.mrb[0].mxu1 %vm736_vm3, %v566_v42 }
 0x115   : > { %3764 = vmatprep.mubr.msk.f32.mxu1 %vm4397_vm1, %v4398_v14 }
 0x172   : > { %v836_v43 = vpop.permute.xlu0 %835 }
 0x176   : > { %v840_v46 = vpop.permute.xlu0 %839 }
 0x177   : > { %v844_v44 = vpop.permute.xlu1 %843 }
 0x17a   : > { %v852_v53 = vpop.permute.xlu0 %851 }
 0x17b   : > { %v848_v52 = vpop.permute.xlu1 %847 }
 0x17e   : > { %v860_v1 = vpop.permute.xlu0 %859 }
 0x17f   : > { %v856_v0 = vpop.permute.xlu1 %855 }
 0x183   : > { %v864_v29 = vpop.permute.xlu1 %863 }
 0x1e7   : > { %v830_v55 = vpop.f32.mrb[0].mxu1 }
 0x1e8   : > { %v869_v56 = vrot.slane %v830_v55, %v4626_v51  ;;  %v3703_v57 = vpop.f32.mrb[1].mxu1 }
 0x1ea   : > { %v871_v2 = vadd.f32 %v869_v56, %v840_v46  ;;  %v870_v4 = vadd.f32 %v869_v56, %v836_v43  ;;  %v874_v5 = vadd.f32 %v869_v56, %v852_v53  ;;  %v872_v6 = vadd.f32 %v869_v56, %v844_v44 }
 0x1eb   : > { %v876_v7 = vadd.f32 %v869_v56, %v860_v1  ;;  %v873_v8 = vadd.f32 %v869_v56, %v848_v52  ;;  %v875_v9 = vadd.f32 %v869_v56, %v856_v0  ;;  %v877_v37 = vadd.f32 %v869_v56, %v864_v29 }
 0x1ec   : > { %vm879_vm12 = vcmp.gt.f32.partialorder %v871_v2, 0.0  ;;  %v887_v10 = vmul.f32 0.2, %v871_v2  ;;  %vm878_vm13 = vcmp.gt.f32.partialorder %v870_v4, 0.0  ;;  %v886_v11 = vmul.f32 0.2, %v870_v4 }
 0x1ed   : > { %vm882_vm14 = vcmp.gt.f32.partialorder %v874_v5, 0.0  ;;  %v890_v15 = vmul.f32 0.2, %v874_v5  ;;  %vm880_vm15 = vcmp.gt.f32.partialorder %v872_v6, 0.0  ;;  %v888_v17 = vmul.f32 0.2, %v872_v6 }
 0x1ee   : > { %v895_v18 = vsel %vm879_vm12, %v871_v2, %v887_v10  ;;  %v894_v19 = vsel %vm878_vm13, %v870_v4, %v886_v11  ;;  %vm884_vm5 = vcmp.gt.f32.partialorder %v876_v7, 0.0  ;;  %v892_v21 = vmul.f32 0.2, %v876_v7 }
 0x1ef   : > { %v903_v22 = vadd.f32 %v895_v18, %v4631_v59  ;;  %v902_v23 = vadd.f32 %v894_v19, %v4635_v61  ;;  %v898_v24 = vsel %vm882_vm14, %v874_v5, %v890_v15  ;;  %v896_v25 = vsel %vm880_vm15, %v872_v6, %v888_v17 }
 0x1f0   : > { %v906_v26 = vadd.f32 %v898_v24, %v4638_v62  ;;  %vm881_vm6 = vcmp.gt.f32.partialorder %v873_v8, 0.0  ;;  %v904_v32 = vadd.f32 %v896_v25, %v4641_v63  ;;  %v889_v33 = vmul.f32 0.2, %v873_v8 }
 0x1f1   : > { %v914_v30 = vsel %vm910_vm9, %v903_v22, -inf  ;;  %v911_v31 = vsel %vm910_vm9, %v902_v23, -inf  ;;  %v900_v34 = vsel %vm884_vm5, %v876_v7, %v892_v21  ;;  %v891_v36 = vmul.f32 0.2, %v875_v9 }
 0x1f2   : > { %915 = vmax.xlane.f32.xlu1 %v914_v30  ;;  %912 = vmax.xlane.f32.xlu0 %v911_v31  ;;  %v897_v38 = vsel %vm881_vm6, %v873_v8, %v889_v33  ;;  %vm883_vm8 = vcmp.gt.f32.partialorder %v875_v9, 0.0  ;;  %v923_v40 = vsel %vm910_vm9, %v906_v26, -inf  ;;  %v917_v41 = vsel %vm910_vm9, %v904_v32, -inf }
 0x1f3   : > { %v908_v42 = vadd.f32 %v900_v34, %v4648_v27  ;;  %v905_v43 = vadd.f32 %v897_v38, %v4657_v35  ;;  %v4665_v44 = vsel %vm595_vm7, 0.0, %v4399_v58  ;;  %v899_v45 = vsel %vm883_vm8, %v875_v9, %v891_v36 }
 0x1f4   : > { %v893_v46 = vmul.f32 0.2, %v877_v37  ;;  %vm885_vm11 = vcmp.gt.f32.partialorder %v877_v37, 0.0  ;;  %v907_v49 = vadd.f32 %v899_v45, %v4665_v44 }
 0x1f5   : > { %v929_v47 = vsel %vm910_vm9, %v908_v42, -inf  ;;  %v920_v48 = vsel %vm910_vm9, %v905_v43, -inf }
 0x1f6   : > { %924 = vmax.xlane.f32.xlu1 %v923_v40  ;;  %918 = vmax.xlane.f32.xlu0 %v917_v41  ;;  %v901_v52 = vsel %vm885_vm11, %v877_v37, %v893_v46  ;;  %v926_v53 = vsel %vm910_vm9, %v907_v49, -inf  ;;  %v568_v46 = vld [vmem:[%s5146_s7] sm:$0xff] }
 0x1f7   : > { %v909_v54 = vadd.f32 %v901_v52, %v4671_v50 }
 0x1f9   : > { %v932_v55 = vsel %vm910_vm9, %v909_v54, -inf }
 0x1fa   : > { %930 = vmax.xlane.f32.xlu1 %v929_v47  ;;  %921 = vmax.xlane.f32.xlu0 %v920_v48  ;;  %v569_v47 = vld [vmem:[%s5146_s7 + $0x8] sm:$0xff] }
 0x1fb   : > { %v4690_v48 = vpack.c.bf16 %v569_v47, %v568_v46 }
 0x1fd   : > { %3996 = vmatprep.subr.bf16.mxu0 %v4690_v48 }
 0x1fe   : > { %927 = vmax.xlane.f32.xlu0 %v926_v53 }
 0x202   : > { %933 = vmax.xlane.f32.xlu0 %v932_v55  ;;  %v3379_v55 = vld [vmem:[%s5145_s6] ss:$0 sm:$0xff] }
 0x27f   : > { %v916_v56 = vpop.xlane.xlu1 %915  ;;  %v913_v57 = vpop.xlane.xlu0 %912 }
 0x280   : > { %v936_v60 = vsub.f32 %v903_v22, %v916_v56  ;;  %v935_v0 = vsub.f32 %v902_v23, %v913_v57 }
 0x282   : > { %v945_v1 = vmul.f32 1.442695, %v936_v60  ;;  %v943_v2 = vmul.f32 1.442695, %v935_v0 }
 0x283   : > { %v925_v4 = vpop.xlane.xlu1 %924  ;;  %v919_v5 = vpop.xlane.xlu0 %918 }
 0x284   : > { %4186 = vpow2.f32 %v945_v1  ;;  %v937_v6 = vsub.f32 %v904_v32, %v919_v5  ;;  %v939_v7 = vsub.f32 %v906_v26, %v925_v4 }
 0x285   : > { %4188 = vpow2.f32 %v943_v2 }
 0x286   : > { %v947_v8 = vmul.f32 1.442695, %v937_v6  ;;  %v951_v15 = vmul.f32 1.442695, %v939_v7 }
 0x287   : > { %v931_v9 = vpop.xlane.xlu1 %930  ;;  %v922_v10 = vpop.xlane.xlu0 %921 }
 0x288   : > { %v938_v11 = vsub.f32 %v905_v43, %v922_v10  ;;  %4190 = vpow2.f32 %v947_v8  ;;  %v941_v17 = vsub.f32 %v908_v42, %v931_v9 }
 0x28a   : > { %v949_v18 = vmul.f32 1.442695, %v938_v11  ;;  %v955_v23 = vmul.f32 1.442695, %v941_v17 }
 0x28b   : > { %v928_v19 = vpop.xlane.xlu0 %927 }
 0x28c   : > { %v940_v21 = vsub.f32 %v907_v49, %v928_v19  ;;  %4192 = vpow2.f32 %v949_v18 }
 0x28d   : > { %4194 = vpow2.f32 %v951_v15 }
 0x28e   : > { %v4187_v22 = vpop.eup %4186  ;;  %v953_v24 = vmul.f32 1.442695, %v940_v21 }
 0x28f   : > { %v4189_v25 = vpop.eup %4188  ;;  %v934_v28 = vpop.xlane.xlu0 %933 }
 0x290   : > { %4196 = vpow2.f32 %v953_v24  ;;  %3720 = vmatprep.mubr.msk.f32.mxu0 %vm910_vm9, %v4189_v25  ;;  %v942_v26 = vsub.f32 %v909_v54, %v934_v28 }
 0x291   : > { %3721 = vmatmul.mubr.msk.f32.vlgmr.msra.gmra.mrb[8].mxu0 %vm910_vm9, %v4187_v22  ;;  %4198 = vpow2.f32 %v955_v23 }
 0x292   : > { %v957_v29 = vmul.f32 1.442695, %v942_v26  ;;  %v4191_v30 = vpop.eup %4190  ;;  %3998 = vmatpush3.bf16.msra.mxu0 %v4690_v48 }
 0x293   : > { %3723 = vmatprep.mubr.msk.f32.mxu0 %vm910_vm9, %v4191_v30 }
 0x294   : > { %4200 = vpow2.f32 %v957_v29 }
 0x296   : > { %v4193_v31 = vpop.eup %4192 }
 0x297   : > { %v4195_v32 = vpop.eup %4194  ;;  %3724 = vmatmul.mubr.msk.f32.gmra.mrb[10].mxu0 %vm910_vm9, %v4193_v31 }
 0x298   : > { %3726 = vmatprep.mubr.msk.f32.mxu0 %vm910_vm9, %v4195_v32 }
 0x29a   : > { %v4197_v33 = vpop.eup %4196 }
 0x29b   : > { %v4199_v34 = vpop.eup %4198  ;;  %3727 = vmatmul.mubr.msk.f32.gmra.mrb[12].mxu0 %vm910_vm9, %v4197_v33 }
 0x29c   : > { %3729 = vmatprep.mubr.msk.f32.mxu0 %vm910_vm9, %v4199_v34 }
 0x29e   : > { %v4201_v36 = vpop.eup %4200 }
 0x29f   : > { %3730 = vmatmul.mubr.msk.f32.gmra.mrb[14].mxu0 %vm910_vm9, %v4201_v36 }
 0x364   : > { %v3722_v37 = vpop.f32.mrb[8].mxu0 }
 0x365   : > { %1106 = vperm.xlu0 %4182, %v3722_v37   ;;  %v1060_v38 = vpop.f32.mrb[9].mxu0 }
 0x366   : > { %1101 = vperm.xlu1 %4183, %v1060_v38  }
 0x36a   : > { %v3725_v39 = vpop.f32.mrb[10].mxu0 }
 0x36b   : > { %v1070_v40 = vpop.f32.mrb[11].mxu0 }
 0x36c   : > { %1111 = vperm.xlu1 %4183, %v1070_v40  }
 0x36e   : > { %v3728_v41 = vpop.f32.mrb[12].mxu0 }
 0x36f   : > { %v1080_v42 = vpop.f32.mrb[13].mxu0 }
 0x370   : > { %1116 = vperm.xlu1 %4183, %v3725_v39   ;;  %1121 = vperm.xlu0 %4182, %v1080_v42  }
 0x372   : > { %v3731_v43 = vpop.f32.mrb[14].mxu0 }
 0x373   : > { %v1090_v45 = vpop.f32.mrb[15].mxu0 }
 0x374   : > { %1126 = vperm.xlu1 %4183, %v3728_v41   ;;  %1131 = vperm.xlu0 %4182, %v1090_v45  }
 0x378   : > { %1136 = vperm.xlu1 %4183, %v3731_v43  }
 0x3e4   : > { %v1107_v49 = vpop.permute.xlu0 %1106 }
 0x3e5   : > { %4202 = vrcp.f32 %v1107_v49  ;;  %v1102_v52 = vpop.permute.xlu1 %1101 }
 0x3e6   : > { %4204 = vrcp.f32 %v1102_v52 }
 0x3eb   : > { %v1112_v53 = vpop.permute.xlu1 %1111 }
 0x3ec   : > { %4206 = vrcp.f32 %v1112_v53 }
 0x3ef   : > { %v4203_v54 = vpop.eup %4202  ;;  %v1117_v60 = vpop.permute.xlu1 %1116 }
 0x3f0   : > { %v4205_v56 = vpop.eup %4204  ;;  %v1142_v57 = vmul.f32 %v4203_v54, %v3722_v37  ;;  %v1122_v0 = vpop.permute.xlu0 %1121  ;;  %4208 = vrcp.f32 %v1117_v60 }
 0x3f1   : > { %v1140_v1 = vmul.f32 %v4205_v56, %v1060_v38  ;;  %4210 = vrcp.f32 %v1122_v0 }
 0x3f2   : > { %v1162_v2 = vadd.f32 %v3379_v55, %v1142_v57 }
 0x3f3   : > { %v1161_v4 = vadd.f32 %v3379_v55, %v1140_v1  ;;  %v1127_v5 = vpop.permute.xlu1 %1126 }
 0x3f4   : > { %v1132_v6 = vpop.permute.xlu0 %1131  ;;  %4212 = vrcp.f32 %v1127_v5  ;;  %v1170_v8 = vmax.f32 %v1162_v2, 0.0 }
 0x3f5   : > { %v1169_v7 = vmax.f32 %v1161_v4, 0.0  ;;  %4214 = vrcp.f32 %v1132_v6 }
 0x3f6   : > { %v4207_v9 = vpop.eup %4206 }
 0x3f7   : > { %3736 = vmatprep.mubr.msk.f32.mxu0 %vm606_vm0, %v1169_v7  ;;  %v1137_v10 = vpop.permute.xlu1 %1136  ;;  %v1144_v11 = vmul.f32 %v4207_v9, %v1070_v40 }
 0x3f8   : > { %3737 = vmatmul.mubr.msk.f32.vlgmr.msra.gmra.mrb[16].mxu0 %vm606_vm0, %v1170_v8  ;;  %4216 = vrcp.f32 %v1137_v10 }
 0x3f9   : > { %v1163_v15 = vadd.f32 %v3379_v55, %v1144_v11  ;;  %v570_v11 = vld [vmem:[%s5147_s8] sm:$0x1] }
 0x3fa   : > { %v4209_v17 = vpop.eup %4208 }
 0x3fb   : > { %v4211_v18 = vpop.eup %4210  ;;  %v1171_v19 = vmax.f32 %v1163_v15, 0.0  ;;  %v1146_v21 = vmul.f32 %v4209_v17, %v3725_v39 }
 0x3fc   : > { %v1148_v22 = vmul.f32 %v4211_v18, %v1080_v42 }
 0x3fd   : > { %3739 = vmatprep.mubr.msk.f32.mxu0 %vm606_vm0, %v1171_v19  ;;  %v1164_v23 = vadd.f32 %v3379_v55, %v1146_v21 }
 0x3fe   : > { %v4213_v24 = vpop.eup %4212  ;;  %v1165_v25 = vadd.f32 %v3379_v55, %v1148_v22 }
 0x3ff   : > { %v4215_v28 = vpop.eup %4214  ;;  %v1172_v26 = vmax.f32 %v1164_v23, 0.0  ;;  %v1150_v29 = vmul.f32 %v4213_v24, %v3728_v41 }
 0x400   : > { %v1173_v30 = vmax.f32 %v1165_v25, 0.0  ;;  %v1152_v31 = vmul.f32 %v4215_v28, %v1090_v45 }
 0x401   : > { %3740 = vmatmul.mubr.msk.f32.gmra.mrb[18].mxu0 %vm606_vm0, %v1172_v26  ;;  %v1166_v32 = vadd.f32 %v3379_v55, %v1150_v29 }
 0x402   : > { %v4217_v33 = vpop.eup %4216  ;;  %3742 = vmatprep.mubr.msk.f32.mxu0 %vm606_vm0, %v1173_v30  ;;  %v1167_v34 = vadd.f32 %v3379_v55, %v1152_v31 }
 0x403   : > { %v1174_v36 = vmax.f32 %v1166_v32, 0.0  ;;  %v1154_v37 = vmul.f32 %v4217_v33, %v3731_v43 }
 0x404   : > { %v1175_v38 = vmax.f32 %v1167_v34, 0.0 }
 0x405   : > { %3743 = vmatmul.mubr.msk.f32.gmra.mrb[20].mxu0 %vm606_vm0, %v1174_v36  ;;  %v1168_v39 = vadd.f32 %v3379_v55, %v1154_v37 }
 0x406   : > { %3745 = vmatprep.mubr.msk.f32.mxu0 %vm606_vm0, %v1175_v38 }
 0x407   : > { %v1176_v40 = vmax.f32 %v1168_v39, 0.0 }
 0x409   : > { %3746 = vmatmul.mubr.msk.f32.gmra.mrb[22].mxu0 %vm606_vm0, %v1176_v40 }
 0x4cb   : > { %v3738_v41 = vpop.f32.mrb[16].mxu0 }
 0x4cc   : > { %v1528_v42 = vsel %vm961_vm2, 1.0, %v3738_v41  ;;  %1408 = vperm.xlu1 %4183, %v3738_v41   ;;  %v1267_v45 = vpop.f32.mrb[17].mxu0 }
 0x4cd   : > { %v4000_v46 = vpack.c.bf16 %v3738_v41, %v1267_v45  ;;  %v1527_v47 = vsel %vm961_vm2, 1.0, %v1267_v45  ;;  %1404 = vperm.xlu0 %4182, %v1267_v45  }
 0x4ce   : > { %v4015_v43 = vpack.c.bf16 %v1528_v42, %v1527_v47 }
 0x4cf   : > { %4002 = vmatpush3.bf16.xpose.msk.msra.mxu1 %vm4580_vm4, %v4000_v46 }
 0x4d0   : > { %4016 = vmatprep.subr.bf16.mxu0 %v4015_v43  ;;  %4003 = vmatprep.subr.bf16.mxu1 %v4396_v13 }
 0x4d1   : > { %4018 = vmatpush3.bf16.msra.mxu0 %v4015_v43 }
 0x4d4   : > { %v3741_v49 = vpop.f32.mrb[18].mxu0 }
 0x4d5   : > { %v1530_v52 = vsel %vm961_vm2, 1.0, %v3741_v49  ;;  %1416 = vperm.xlu1 %4183, %v3741_v49   ;;  %v1277_v53 = vpop.f32.mrb[19].mxu0 }
 0x4d6   : > { %v4004_v54 = vpack.c.bf16 %v3741_v49, %v1277_v53  ;;  %v1529_v55 = vsel %vm961_vm2, 1.0, %v1277_v53  ;;  %1412 = vperm.xlu0 %4182, %v1277_v53  }
 0x4d7   : > { %v4019_v56 = vpack.c.bf16 %v1530_v52, %v1529_v55 }
 0x4d8   : > { %v3744_v57 = vpop.f32.mrb[20].mxu0  ;;  %4006 = vmatpush3.bf16.xpose.msk.msra.mxu1 %vm4580_vm4, %v4004_v54 }
 0x4d9   : > { %v1532_v60 = vsel %vm961_vm2, 1.0, %v3744_v57  ;;  %4020 = vmatprep.subr.bf16.mxu0 %v4019_v56  ;;  %1424 = vperm.xlu1 %4183, %v3744_v57   ;;  %v1287_v0 = vpop.f32.mrb[21].mxu0 }
 0x4da   : > { %v4008_v1 = vpack.c.bf16 %v3744_v57, %v1287_v0  ;;  %v1531_v2 = vsel %vm961_vm2, 1.0, %v1287_v0  ;;  %4022 = vmatpush3.bf16.msra.mxu0 %v4019_v56  ;;  %1420 = vperm.xlu0 %4182, %v1287_v0  }
 0x4db   : > { %v4023_v4 = vpack.c.bf16 %v1532_v60, %v1531_v2  ;;  %4007 = vmatprep.subr.bf16.mxu1 %v4396_v13 }
 0x4dc   : > { %v3747_v5 = vpop.f32.mrb[22].mxu0 }
 0x4dd   : > { %v1534_v6 = vsel %vm961_vm2, 1.0, %v3747_v5  ;;  %4024 = vmatprep.subr.bf16.mxu0 %v4023_v4  ;;  %1432 = vperm.xlu1 %4183, %v3747_v5   ;;  %v1297_v7 = vpop.f32.mrb[23].mxu0 }
 0x4de   : > { %v4012_v8 = vpack.c.bf16 %v3747_v5, %v1297_v7  ;;  %v1533_v9 = vsel %vm961_vm2, 1.0, %v1297_v7  ;;  %4026 = vmatpush3.bf16.msra.mxu0 %v4023_v4  ;;  %1428 = vperm.xlu0 %4182, %v1297_v7  }
 0x4df   : > { %v4027_v10 = vpack.c.bf16 %v1534_v6, %v1533_v9 }
 0x4e0   : > { %4010 = vmatpush3.bf16.xpose.msk.msra.mxu1 %vm4580_vm4, %v4008_v1 }
 0x4e1   : > { %4028 = vmatprep.subr.bf16.mxu0 %v4027_v10  ;;  %4011 = vmatprep.subr.bf16.mxu1 %v4396_v13 }
 0x4e2   : > { %4030 = vmatpush3.bf16.msra.mxu0 %v4027_v10 }
 0x4e3   : > { %4031 = vmatprep.subr.bf16.mxu0 %v4396_v13 }
 0x4e8   : > { %4014 = vmatpush3.bf16.xpose.msk.msra.mxu1 %vm4580_vm4, %v4012_v8 }
 0x4e9   : > { %4051 = vmatprep.subr.bf16.mxu1 %v4396_v13 }
 0x4ef   : > { %3765 = vmatmul.mubr.msk.f32.vlgmr.msra.gmra.mrb[2].mxu1 %vm736_vm3, %v570_v11 }
 0x4f0   : > { %3846 = vmatprep.mubr.msk.f32.mxu1 %vm4397_vm1, %v4398_v14 }
 0x54b   : > { %v1409_v18 = vpop.permute.xlu1 %1408 }
 0x54c   : > { %v1405_v15 = vpop.permute.xlu0 %1404 }
 0x554   : > { %v1417_v19 = vpop.permute.xlu1 %1416 }
 0x555   : > { %v1413_v17 = vpop.permute.xlu0 %1412 }
 0x558   : > { %v1425_v25 = vpop.permute.xlu1 %1424 }
 0x559   : > { %v1421_v21 = vpop.permute.xlu0 %1420 }
 0x55c   : > { %v1433_v52 = vpop.permute.xlu1 %1432 }
 0x55d   : > { %v1429_v28 = vpop.permute.xlu0 %1428 }
 0x5c2   : > { %v1399_v22 = vpop.f32.mrb[2].mxu1 }
 0x5c3   : > { %v1438_v23 = vrot.slane %v1399_v22, %v4626_v51  ;;  %v3766_v24 = vpop.f32.mrb[3].mxu1 }
 0x5c5   : > { %v1440_v26 = vadd.f32 %v1438_v23, %v1409_v18  ;;  %v1439_v29 = vadd.f32 %v1438_v23, %v1405_v15  ;;  %v1443_v30 = vadd.f32 %v1438_v23, %v1421_v21  ;;  %v1441_v31 = vadd.f32 %v1438_v23, %v1413_v17 }
 0x5c6   : > { %v1445_v32 = vadd.f32 %v1438_v23, %v1429_v28  ;;  %v1442_v33 = vadd.f32 %v1438_v23, %v1417_v19  ;;  %v1444_v34 = vadd.f32 %v1438_v23, %v1425_v25 }
 0x5c7   : > { %vm1448_vm12 = vcmp.gt.f32.partialorder %v1440_v26, 0.0  ;;  %v1456_v36 = vmul.f32 0.2, %v1440_v26  ;;  %vm1447_vm13 = vcmp.gt.f32.partialorder %v1439_v29, 0.0  ;;  %v1455_v37 = vmul.f32 0.2, %v1439_v29 }
 0x5c8   : > { %vm1451_vm14 = vcmp.gt.f32.partialorder %v1443_v30, 0.0  ;;  %v1459_v38 = vmul.f32 0.2, %v1443_v30  ;;  %vm1449_vm15 = vcmp.gt.f32.partialorder %v1441_v31, 0.0  ;;  %v1457_v39 = vmul.f32 0.2, %v1441_v31 }
 0x5c9   : > { %v1464_v40 = vsel %vm1448_vm12, %v1440_v26, %v1456_v36  ;;  %v1463_v41 = vsel %vm1447_vm13, %v1439_v29, %v1455_v37  ;;  %vm1453_vm5 = vcmp.gt.f32.partialorder %v1445_v32, 0.0  ;;  %v1461_v42 = vmul.f32 0.2, %v1445_v32 }
 0x5ca   : > { %v1472_v45 = vadd.f32 %v1464_v40, %v4631_v59  ;;  %v1471_v46 = vadd.f32 %v1463_v41, %v4635_v61  ;;  %v1467_v47 = vsel %vm1451_vm14, %v1443_v30, %v1459_v38  ;;  %v1465_v43 = vsel %vm1449_vm15, %v1441_v31, %v1457_v39 }
 0x5cb   : > { %v1475_v49 = vadd.f32 %v1467_v47, %v4638_v62  ;;  %vm1450_vm6 = vcmp.gt.f32.partialorder %v1442_v33, 0.0  ;;  %v1473_v55 = vadd.f32 %v1465_v43, %v4641_v63  ;;  %v1458_v56 = vmul.f32 0.2, %v1442_v33 }
 0x5cc   : > { %v1482_v53 = vsel %vm910_vm9, %v1472_v45, -inf  ;;  %v1479_v54 = vsel %vm910_vm9, %v1471_v46, -inf  ;;  %v1469_v57 = vsel %vm1453_vm5, %v1445_v32, %v1461_v42  ;;  %v1460_v60 = vmul.f32 0.2, %v1444_v34 }
 0x5cd   : > { %1483 = vmax.xlane.f32.xlu1 %v1482_v53  ;;  %1480 = vmax.xlane.f32.xlu0 %v1479_v54  ;;  %v1446_v59 = vadd.f32 %v1438_v23, %v1433_v52  ;;  %v1466_v0 = vsel %vm1450_vm6, %v1442_v33, %v1458_v56  ;;  %vm1452_vm7 = vcmp.gt.f32.partialorder %v1444_v34, 0.0  ;;  %v1491_v61 = vsel %vm910_vm9, %v1475_v49, -inf }
 0x5ce   : > { %v1485_v62 = vsel %vm910_vm9, %v1473_v55, -inf  ;;  %v1477_v1 = vadd.f32 %v1469_v57, %v4648_v27  ;;  %v1474_v2 = vadd.f32 %v1466_v0, %v4657_v35  ;;  %v1468_v4 = vsel %vm1452_vm7, %v1444_v34, %v1460_v60 }
 0x5cf   : > { %v1462_v63 = vmul.f32 0.2, %v1446_v59  ;;  %vm1454_vm8 = vcmp.gt.f32.partialorder %v1446_v59, 0.0  ;;  %v1476_v7 = vadd.f32 %v1468_v4, %v4665_v44 }
 0x5d0   : > { %v1497_v5 = vsel %vm910_vm9, %v1477_v1, -inf  ;;  %v1488_v6 = vsel %vm910_vm9, %v1474_v2, -inf }
 0x5d1   : > { %1492 = vmax.xlane.f32.xlu1 %v1491_v61  ;;  %1486 = vmax.xlane.f32.xlu0 %v1485_v62  ;;  %v1470_v8 = vsel %vm1454_vm8, %v1446_v59, %v1462_v63  ;;  %v1494_v9 = vsel %vm910_vm9, %v1476_v7, -inf }
 0x5d2   : > { %v1478_v27 = vadd.f32 %v1470_v8, %v4671_v50 }
 0x5d4   : > { %v1500_v35 = vsel %vm910_vm9, %v1478_v27, -inf }
 0x5d5   : > { %1498 = vmax.xlane.f32.xlu1 %v1497_v5  ;;  %1489 = vmax.xlane.f32.xlu0 %v1488_v6 }
 0x5d9   : > { %1495 = vmax.xlane.f32.xlu0 %v1494_v9 }
 0x5dd   : > { %1501 = vmax.xlane.f32.xlu0 %v1500_v35 }
 0x65a   : > { %v1484_v10 = vpop.xlane.xlu1 %1483  ;;  %v1481_v11 = vpop.xlane.xlu0 %1480 }
 0x65b   : > { %v1504_v15 = vsub.f32 %v1472_v45, %v1484_v10  ;;  %v1503_v17 = vsub.f32 %v1471_v46, %v1481_v11 }
 0x65d   : > { %v1513_v18 = vmul.f32 1.442695, %v1504_v15  ;;  %v1511_v19 = vmul.f32 1.442695, %v1503_v17 }
 0x65e   : > { %v1493_v21 = vpop.xlane.xlu1 %1492  ;;  %v1487_v22 = vpop.xlane.xlu0 %1486 }
 0x65f   : > { %4218 = vpow2.f32 %v1513_v18  ;;  %v1505_v44 = vsub.f32 %v1473_v55, %v1487_v22  ;;  %v1507_v23 = vsub.f32 %v1475_v49, %v1493_v21 }
 0x660   : > { %4220 = vpow2.f32 %v1511_v19 }
 0x661   : > { %v1515_v24 = vmul.f32 1.442695, %v1505_v44  ;;  %v1519_v26 = vmul.f32 1.442695, %v1507_v23 }
 0x662   : > { %v1499_v25 = vpop.xlane.xlu1 %1498  ;;  %v1490_v28 = vpop.xlane.xlu0 %1489 }
 0x663   : > { %v1506_v50 = vsub.f32 %v1474_v2, %v1490_v28  ;;  %4222 = vpow2.f32 %v1515_v24  ;;  %v1509_v29 = vsub.f32 %v1477_v1, %v1499_v25  ;;  %v3405_v1 = vld [vmem:[%s5148_s9] ss:$0 sm:$0xff] }
 0x665   : > { %v1517_v30 = vmul.f32 1.442695, %v1506_v50  ;;  %v1523_v34 = vmul.f32 1.442695, %v1509_v29 }
 0x666   : > { %v1496_v31 = vpop.xlane.xlu0 %1495 }
 0x667   : > { %v1508_v32 = vsub.f32 %v1476_v7, %v1496_v31  ;;  %4224 = vpow2.f32 %v1517_v30 }
 0x668   : > { %4226 = vpow2.f32 %v1519_v26 }
 0x669   : > { %v4219_v33 = vpop.eup %4218  ;;  %v1521_v36 = vmul.f32 1.442695, %v1508_v32 }
 0x66a   : > { %v4221_v37 = vpop.eup %4220  ;;  %v1502_v38 = vpop.xlane.xlu0 %1501 }
 0x66b   : > { %4228 = vpow2.f32 %v1521_v36  ;;  %3783 = vmatprep.mubr.msk.f32.mxu0 %vm910_vm9, %v4221_v37  ;;  %v1510_v39 = vsub.f32 %v1478_v27, %v1502_v38 }
 0x66c   : > { %3784 = vmatmul.mubr.msk.f32.vlgmr.msra.gmra.mrb[24].mxu0 %vm910_vm9, %v4219_v33  ;;  %4230 = vpow2.f32 %v1523_v34 }
 0x66d   : > { %v1525_v40 = vmul.f32 1.442695, %v1510_v39  ;;  %v4223_v41 = vpop.eup %4222 }
 0x66e   : > { %3786 = vmatprep.mubr.msk.f32.mxu0 %vm910_vm9, %v4223_v41 }
 0x66f   : > { %4232 = vpow2.f32 %v1525_v40 }
 0x671   : > { %v4225_v42 = vpop.eup %4224 }
 0x672   : > { %v4227_v45 = vpop.eup %4226  ;;  %3787 = vmatmul.mubr.msk.f32.gmra.mrb[26].mxu0 %vm910_vm9, %v4225_v42 }
 0x673   : > { %3789 = vmatprep.mubr.msk.f32.mxu0 %vm910_vm9, %v4227_v45 }
 0x675   : > { %v4229_v46 = vpop.eup %4228 }
 0x676   : > { %v4231_v47 = vpop.eup %4230  ;;  %3790 = vmatmul.mubr.msk.f32.gmra.mrb[28].mxu0 %vm910_vm9, %v4229_v46 }
 0x677   : > { %3792 = vmatprep.mubr.msk.f32.mxu0 %vm910_vm9, %v4231_v47 }
 0x679   : > { %v4233_v43 = vpop.eup %4232 }
 0x67a   : > { %3793 = vmatmul.mubr.msk.f32.gmra.mrb[30].mxu0 %vm910_vm9, %v4233_v43  ;;  %v572_v43 = vld [vmem:[%s5149_s10] sm:$0x1] }
 0x67b   : > { %3811 = vmatprep.mubr.msk.f32.mxu0 %vm4397_vm1, %v4398_v14 }
 0x73f   : > { %v3785_v49 = vpop.f32.mrb[24].mxu0 }
 0x740   : > { %1671 = vperm.xlu0 %4182, %v3785_v49   ;;  %v1625_v52 = vpop.f32.mrb[25].mxu0 }
 0x741   : > { %1666 = vperm.xlu1 %4183, %v1625_v52  }
 0x745   : > { %v3788_v53 = vpop.f32.mrb[26].mxu0 }
 0x746   : > { %v1635_v54 = vpop.f32.mrb[27].mxu0 }
 0x747   : > { %1676 = vperm.xlu1 %4183, %v1635_v54  }
 0x749   : > { %v3791_v55 = vpop.f32.mrb[28].mxu0 }
 0x74a   : > { %v1645_v56 = vpop.f32.mrb[29].mxu0 }
 0x74b   : > { %1681 = vperm.xlu1 %4183, %v3788_v53   ;;  %1686 = vperm.xlu0 %4182, %v1645_v56  }
 0x74d   : > { %v3794_v57 = vpop.f32.mrb[30].mxu0 }
 0x74e   : > { %v1655_v60 = vpop.f32.mrb[31].mxu0 }
 0x74f   : > { %1691 = vperm.xlu1 %4183, %v3791_v55   ;;  %1696 = vperm.xlu0 %4182, %v1655_v60  }
 0x753   : > { %1701 = vperm.xlu1 %4183, %v3794_v57  }
 0x7bf   : > { %v1672_v59 = vpop.permute.xlu0 %1671 }
 0x7c0   : > { %4234 = vrcp.f32 %v1672_v59  ;;  %v1667_v0 = vpop.permute.xlu1 %1666 }
 0x7c1   : > { %4236 = vrcp.f32 %v1667_v0 }
 0x7c6   : > { %v1677_v61 = vpop.permute.xlu1 %1676 }
 0x7c7   : > { %4238 = vrcp.f32 %v1677_v61 }
 0x7ca   : > { %v4235_v62 = vpop.eup %4234  ;;  %v1682_v63 = vpop.permute.xlu1 %1681 }
 0x7cb   : > { %v4237_v2 = vpop.eup %4236  ;;  %v1707_v4 = vmul.f32 %v4235_v62, %v3785_v49  ;;  %v1687_v5 = vpop.permute.xlu0 %1686  ;;  %4240 = vrcp.f32 %v1682_v63  ;;  %v3415_v49 = vld [vmem:[%s4550_s26 + $0x40] sm:$0xff] }
 0x7cc   : > { %v1705_v6 = vmul.f32 %v4237_v2, %v1625_v52  ;;  %4242 = vrcp.f32 %v1687_v5  ;;  %v3416_v52 = vld [vmem:[%s4550_s26 + $0x48] sm:$0xff] }
 0x7cd   : > { %v1727_v7 = vadd.f32 %v3405_v1, %v1707_v4 }
 0x7ce   : > { %v1726_v8 = vadd.f32 %v3405_v1, %v1705_v6  ;;  %v1692_v9 = vpop.permute.xlu1 %1691 }
 0x7cf   : > { %v1697_v27 = vpop.permute.xlu0 %1696  ;;  %v1735_v35 = vmax.f32 %v1727_v7, 0.0  ;;  %4244 = vrcp.f32 %v1692_v9 }
 0x7d0   : > { %v1734_v10 = vmax.f32 %v1726_v8, 0.0  ;;  %4246 = vrcp.f32 %v1697_v27 }
 0x7d1   : > { %1743 = vst.msk [vmem:[%s4774_s0 + $0x8] sm:$0xff] %vm606_vm0, %v1735_v35  ;;  %v4239_v15 = vpop.eup %4238 }
 0x7d2   : > { %1742 = vst.msk [vmem:[%s4774_s0] sm:$0xff] %vm606_vm0, %v1734_v10  ;;  %v4032_v17 = vpack.c.bf16 %v1735_v35, %v1734_v10  ;;  %v1709_v18 = vmul.f32 %v4239_v15, %v1635_v54  ;;  %v1702_v19 = vpop.permute.xlu1 %1701  ;;  %v3418_v54 = vld [vmem:[%s4550_s26 + $0x58] sm:$0xff] }
 0x7d3   : > { %4248 = vrcp.f32 %v1702_v19 }
 0x7d4   : > { %4034 = vmatpush3.bf16.xpose.msk.msra.mxu0 %vm4780_vm10, %v4032_v17  ;;  %v1728_v21 = vadd.f32 %v3405_v1, %v1709_v18 }
 0x7d5   : > { %4035 = vmatprep.subr.bf16.mxu0 %v4396_v13  ;;  %v4241_v22 = vpop.eup %4240 }
 0x7d6   : > { %v4243_v44 = vpop.eup %4242  ;;  %v1711_v23 = vmul.f32 %v4241_v22, %v3788_v53  ;;  %v1736_v24 = vmax.f32 %v1728_v21, 0.0  ;;  %v3417_v53 = vld [vmem:[%s4550_s26 + $0x50] sm:$0xff] }
 0x7d7   : > { %v1713_v25 = vmul.f32 %v4243_v44, %v1645_v56  ;;  %v3420_v56 = vld [vmem:[%s4550_s26 + $0x68] sm:$0xff] }
 0x7d8   : > { %v1729_v28 = vadd.f32 %v3405_v1, %v1711_v23  ;;  %1744 = vst.msk [vmem:[%s4774_s0 + $0x10] sm:$0xff] %vm606_vm0, %v1736_v24 }
 0x7d9   : > { %v4245_v50 = vpop.eup %4244  ;;  %v1730_v26 = vadd.f32 %v3405_v1, %v1713_v25  ;;  %v4326_v25 = vld [vmem:[%s5144_s5] sm:$0x1] }
 0x7da   : > { %v4247_v29 = vpop.eup %4246  ;;  %v1715_v30 = vmul.f32 %v4245_v50, %v3791_v55  ;;  %v1737_v31 = vmax.f32 %v1729_v28, 0.0  ;;  %v3419_v55 = vld [vmem:[%s4550_s26 + $0x60] sm:$0xff] }
 0x7db   : > { %v1717_v32 = vmul.f32 %v4247_v29, %v1655_v60  ;;  %v1738_v33 = vmax.f32 %v1730_v26, 0.0  ;;  %v3424_v29 = vld [vmem:[%s4620_s22 + $0x48] sm:$0xff] }
 0x7dc   : > { %v1731_v34 = vadd.f32 %v3405_v1, %v1715_v30  ;;  %1745 = vst.msk [vmem:[%s4774_s0 + $0x18] sm:$0xff] %vm606_vm0, %v1737_v31  ;;  %v4036_v36 = vpack.c.bf16 %v1737_v31, %v1736_v24  ;;  %v3423_v30 = vld [vmem:[%s4620_s22 + $0x40] sm:$0xff]  ;;  %vm1905_vm11 = vcmp.gt.f32.partialorder %v3424_v29, 0.0 }
 0x7dd   : > { %v4249_v37 = vpop.eup %4248  ;;  %v1732_v38 = vadd.f32 %v3405_v1, %v1717_v32  ;;  %1746 = vst.msk [vmem:[%s4774_s0 + $0x20] sm:$0xff] %vm606_vm0, %v1738_v33  ;;  %v3427_v31 = vld [vmem:[%s4620_s22 + $0x60] sm:$0xff]  ;;  %v3425_v32 = vld [vmem:[%s4620_s22 + $0x50] sm:$0xff]  ;;  %vm1904_vm12 = vcmp.gt.f32.partialorder %v3423_v30, 0.0 }
 0x7de   : > { %v1719_v39 = vmul.f32 %v4249_v37, %v3794_v57  ;;  %4038 = vmatpush3.bf16.xpose.msk.msra.mxu0 %vm4780_vm10, %v4036_v36  ;;  %v1739_v40 = vmax.f32 %v1731_v34, 0.0  ;;  %v3421_v57 = vld [vmem:[%s4550_s26 + $0x70] sm:$0xff]  ;;  %vm1908_vm13 = vcmp.gt.f32.partialorder %v3427_v31, 0.0  ;;  %vm1906_vm14 = vcmp.gt.f32.partialorder %v3425_v32, 0.0 }
 0x7df   : > { %4039 = vmatprep.subr.bf16.mxu0 %v4396_v13  ;;  %v1740_v41 = vmax.f32 %v1732_v38, 0.0  ;;  %v3429_v36 = vld [vmem:[%s4620_s22 + $0x70] sm:$0xff] }
 0x7e0   : > { %v1733_v42 = vadd.f32 %v3405_v1, %v1719_v39  ;;  %1747 = vst.msk [vmem:[%s4774_s0 + $0x28] sm:$0xff] %vm606_vm0, %v1739_v40  ;;  %v4040_v45 = vpack.c.bf16 %v1739_v40, %v1738_v33  ;;  %v3426_v40 = vld [vmem:[%s4620_s22 + $0x58] sm:$0xff]  ;;  %vm1910_vm15 = vcmp.gt.f32.partialorder %v3429_v36, 0.0 }
 0x7e1   : > { %1748 = vst.msk [vmem:[%s4774_s0 + $0x30] sm:$0xff] %vm606_vm0, %v1740_v41  ;;  %vm1907_vm5 = vcmp.gt.f32.partialorder %v3426_v40, 0.0 }
 0x7e2   : > { %v1741_v46 = vmax.f32 %v1733_v42, 0.0  ;;  %v4881_v42 = vsel %vm1908_vm13, 0.0, %v4399_v58 }
 0x7e4   : > { %1749 = vst.msk [vmem:[%s4774_s0 + $0x38] sm:$0xff] %vm606_vm0, %v1741_v46  ;;  %v4044_v47 = vpack.c.bf16 %v1741_v46, %v1740_v41  ;;  %v4878_v41 = vsel %vm1904_vm12, 0.0, %v4399_v58 }
 0x7e6   : > { %4042 = vmatpush3.bf16.xpose.msk.msra.mxu0 %vm4780_vm10, %v4040_v45  ;;  %v4884_v45 = vsel %vm1906_vm14, 0.0, %v4399_v58 }
 0x7e7   : > { %4043 = vmatprep.subr.bf16.mxu0 %v4396_v13 }
 0x7ee   : > { %4046 = vmatpush3.bf16.xpose.msk.msra.mxu0 %vm4780_vm10, %v4044_v47 }
 0x7ef   : > { %4048 = vmatprep.subr.bf16.mxu0 %v4537_v3 }
 0x7f5   : > { %3812 = vmatmul.mubr.msk.f32.vlgmr.msra.gmra.mrb[32].mxu0 %vm606_vm0, %v572_v43 }
 0x7f6   : > { %4050 = vmatpush3.bf16.msra.mxu0 %v4537_v3  ;;  %3818 = vmatprep.mubr.msk.f32.mxu0 %vm606_vm0, %v3415_v49  ;;  %v3422_v3 = vld [vmem:[%s4550_s26 + $0x78] sm:$0xff] }
 0x7f9   : > { %3819 = vmatmul.mubr.msk.f32.vlgmr.msra.gmra.mrb[34].mxu0 %vm606_vm0, %v3416_v52 }
 0x7fa   : > { %3821 = vmatprep.mubr.msk.f32.mxu0 %vm606_vm0, %v3417_v53 }
 0x7fd   : > { %3822 = vmatmul.mubr.msk.f32.gmra.mrb[36].mxu0 %vm606_vm0, %v3418_v54 }
 0x7fe   : > { %3824 = vmatprep.mubr.msk.f32.mxu0 %vm606_vm0, %v3419_v55 }
 0x801   : > { %3825 = vmatmul.mubr.msk.f32.gmra.mrb[38].mxu0 %vm606_vm0, %v3420_v56 }
 0x802   : > { %3827 = vmatprep.mubr.msk.f32.mxu0 %vm606_vm0, %v3421_v57 }
 0x805   : > { %3828 = vmatmul.mubr.msk.f32.gmra.mrb[40].mxu0 %vm606_vm0, %v3422_v3 }
 0x8c8   : > { %v4831_v60 = vpop.f32.mrb[32].mxu0 }
 0x8c9   : > { %v3813_v59 = vpop.f32.mrb[33].mxu0 }
 0x8cc   : > { %v3820_v0 = vpop.f32.mrb[34].mxu0 }
 0x8cd   : > { %v2268_v61 = vsel %vm961_vm2, 1.0, %v3820_v0  ;;  %2148 = vperm.xlu1 %4183, %v3820_v0   ;;  %v2010_v62 = vpop.f32.mrb[35].mxu0 }
 0x8ce   : > { %v4052_v1 = vpack.c.bf16 %v3820_v0, %v2010_v62  ;;  %v2267_v2 = vsel %vm961_vm2, 1.0, %v2010_v62  ;;  %2144 = vperm.xlu0 %4182, %v2010_v62  }
 0x8cf   : > { %v4067_v4 = vpack.c.bf16 %v2268_v61, %v2267_v2 }
 0x8d0   : > { %v3823_v63 = vpop.f32.mrb[36].mxu0  ;;  %4054 = vmatpush3.bf16.xpose.msk.msra.mxu1 %vm4580_vm4, %v4052_v1 }
 0x8d1   : > { %v2270_v5 = vsel %vm961_vm2, 1.0, %v3823_v63  ;;  %4068 = vmatprep.subr.bf16.mxu0 %v4067_v4  ;;  %2156 = vperm.xlu1 %4183, %v3823_v63   ;;  %v2020_v6 = vpop.f32.mrb[37].mxu0 }
 0x8d2   : > { %v4056_v7 = vpack.c.bf16 %v3823_v63, %v2020_v6  ;;  %v2269_v8 = vsel %vm961_vm2, 1.0, %v2020_v6  ;;  %4070 = vmatpush3.bf16.msra.mxu0 %v4067_v4  ;;  %2152 = vperm.xlu0 %4182, %v2020_v6  }
 0x8d3   : > { %4055 = vmatprep.subr.bf16.mxu1 %v4396_v13  ;;  %v4071_v9 = vpack.c.bf16 %v2270_v5, %v2269_v8  ;;  %v3428_v8 = vld [vmem:[%s4620_s22 + $0x68] sm:$0xff] }
 0x8d4   : > { %v3826_v27 = vpop.f32.mrb[38].mxu0  ;;  %vm1909_vm14 = vcmp.gt.f32.partialorder %v3428_v8, 0.0 }
 0x8d5   : > { %v2272_v35 = vsel %vm961_vm2, 1.0, %v3826_v27  ;;  %2164 = vperm.xlu1 %4183, %v3826_v27   ;;  %v2030_v10 = vpop.f32.mrb[39].mxu0  ;;  %4072 = vmatprep.subr.bf16.mxu0 %v4071_v9 }
 0x8d6   : > { %v4060_v15 = vpack.c.bf16 %v3826_v27, %v2030_v10  ;;  %v2271_v17 = vsel %vm961_vm2, 1.0, %v2030_v10  ;;  %2160 = vperm.xlu0 %4182, %v2030_v10   ;;  %4074 = vmatpush3.bf16.msra.mxu0 %v4071_v9 }
 0x8d7   : > { %v4075_v18 = vpack.c.bf16 %v2272_v35, %v2271_v17 }
 0x8d8   : > { %v3829_v19 = vpop.f32.mrb[40].mxu0  ;;  %4058 = vmatpush3.bf16.xpose.msk.msra.mxu1 %vm4580_vm4, %v4056_v7  ;;  %v4891_v7 = vsel %vm1910_vm15, 0.0, %v4399_v58 }
 0x8d9   : > { %v2274_v21 = vsel %vm961_vm2, 1.0, %v3829_v19  ;;  %2172 = vperm.xlu1 %4183, %v3829_v19   ;;  %v2040_v22 = vpop.f32.mrb[41].mxu0  ;;  %4059 = vmatprep.subr.bf16.mxu1 %v4396_v13 }
 0x8da   : > { %v4064_v44 = vpack.c.bf16 %v3829_v19, %v2040_v22  ;;  %v2273_v23 = vsel %vm961_vm2, 1.0, %v2040_v22  ;;  %2168 = vperm.xlu0 %4182, %v2040_v22   ;;  %4076 = vmatprep.subr.bf16.mxu0 %v4075_v18 }
 0x8db   : > { %4078 = vmatpush3.bf16.msra.mxu0 %v4075_v18  ;;  %v4079_v24 = vpack.c.bf16 %v2274_v21, %v2273_v23  ;;  %v4900_v18 = vsel %vm1907_vm5, 0.0, %v4399_v58 }
 0x8dd   : > { %4080 = vmatprep.subr.bf16.mxu0 %v4079_v24 }
 0x8df   : > { %4082 = vmatpush3.bf16.msra.mxu0 %v4079_v24 }
 0x8e0   : > { %4062 = vmatpush3.bf16.xpose.msk.msra.mxu1 %vm4580_vm4, %v4060_v15  ;;  %4087 = vmatprep.subr.bf16.mxu0 %v4396_v13 }
 0x8e1   : > { %4063 = vmatprep.subr.bf16.mxu1 %v4396_v13 }
 0x8e8   : > { %4066 = vmatpush3.bf16.xpose.msk.msra.mxu1 %vm4580_vm4, %v4064_v44  ;;  %v3430_v44 = vld [vmem:[%s4620_s22 + $0x78] sm:$0xff] }
 0x8e9   : > { %4084 = vmatprep.subr.bf16.mxu1 %v4690_v48  ;;  %vm1911_vm5 = vcmp.gt.f32.partialorder %v3430_v44, 0.0 }
 0x8ef   : > { %3847 = vmatmul.mubr.msk.f32.vlgmr.msra.gmra.mrb[4].mxu1 %vm736_vm3, %v4326_v25 }
 0x8f0   : > { %4086 = vmatpush3.bf16.msra.mxu1 %v4690_v48  ;;  %v4874_v48 = vsel %vm1905_vm11, 0.0, %v4399_v58 }
 0x94c   : > { %v2149_v50 = vpop.permute.xlu1 %2148 }
 0x94d   : > { %v2145_v28 = vpop.permute.xlu0 %2144 }
 0x950   : > { %v2157_v33 = vpop.permute.xlu1 %2156 }
 0x951   : > { %v2153_v26 = vpop.permute.xlu0 %2152 }
 0x954   : > { %v2165_v46 = vpop.permute.xlu1 %2164 }
 0x955   : > { %v2161_v34 = vpop.permute.xlu0 %2160 }
 0x958   : > { %v2173_v9 = vpop.permute.xlu1 %2172 }
 0x959   : > { %v2169_v47 = vpop.permute.xlu0 %2168 }
 0x9c2   : > { %v2139_v37 = vpop.f32.mrb[4].mxu1 }
 0x9c3   : > { %v2178_v38 = vrot.slane %v2139_v37, %v4626_v51  ;;  %v3848_v39 = vpop.f32.mrb[5].mxu1 }
 0x9c5   : > { %v2180_v43 = vadd.f32 %v2178_v38, %v2149_v50  ;;  %v2179_v49 = vadd.f32 %v2178_v38, %v2145_v28  ;;  %v2183_v52 = vadd.f32 %v2178_v38, %v2161_v34  ;;  %v2181_v53 = vadd.f32 %v2178_v38, %v2153_v26 }
 0x9c6   : > { %v2185_v54 = vadd.f32 %v2178_v38, %v2169_v47  ;;  %v2182_v55 = vadd.f32 %v2178_v38, %v2157_v33  ;;  %v2184_v56 = vadd.f32 %v2178_v38, %v2165_v46  ;;  %v2186_v21 = vadd.f32 %v2178_v38, %v2173_v9 }
 0x9c7   : > { %vm2188_vm6 = vcmp.gt.f32.partialorder %v2180_v43, 0.0  ;;  %v2196_v57 = vmul.f32 0.2, %v2180_v43  ;;  %vm2187_vm7 = vcmp.gt.f32.partialorder %v2179_v49, 0.0  ;;  %v2195_v3 = vmul.f32 0.2, %v2179_v49 }
 0x9c8   : > { %vm2191_vm8 = vcmp.gt.f32.partialorder %v2183_v52, 0.0  ;;  %v2199_v59 = vmul.f32 0.2, %v2183_v52  ;;  %vm2189_vm11 = vcmp.gt.f32.partialorder %v2181_v53, 0.0  ;;  %v2197_v0 = vmul.f32 0.2, %v2181_v53 }
 0x9c9   : > { %v2204_v61 = vsel %vm2188_vm6, %v2180_v43, %v2196_v57  ;;  %v2203_v62 = vsel %vm2187_vm7, %v2179_v49, %v2195_v3  ;;  %vm2193_vm12 = vcmp.gt.f32.partialorder %v2185_v54, 0.0  ;;  %v2201_v1 = vmul.f32 0.2, %v2185_v54 }
 0x9ca   : > { %v2212_v2 = vadd.f32 %v2204_v61, %v4874_v48  ;;  %v2211_v4 = vadd.f32 %v2203_v62, %v4878_v41  ;;  %v2207_v63 = vsel %vm2191_vm8, %v2183_v52, %v2199_v59  ;;  %v2205_v5 = vsel %vm2189_vm11, %v2181_v53, %v2197_v0 }
 0x9cb   : > { %v2215_v6 = vadd.f32 %v2207_v63, %v4881_v42  ;;  %vm2190_vm13 = vcmp.gt.f32.partialorder %v2182_v55, 0.0  ;;  %v2213_v10 = vadd.f32 %v2205_v5, %v4884_v45  ;;  %v2198_v15 = vmul.f32 0.2, %v2182_v55 }
 0x9cc   : > { %v2222_v27 = vsel %vm910_vm9, %v2212_v2, -inf  ;;  %v2219_v35 = vsel %vm910_vm9, %v2211_v4, -inf  ;;  %v2209_v17 = vsel %vm2193_vm12, %v2185_v54, %v2201_v1  ;;  %v2200_v19 = vmul.f32 0.2, %v2184_v56 }
 0x9cd   : > { %2223 = vmax.xlane.f32.xlu1 %v2222_v27  ;;  %2220 = vmax.xlane.f32.xlu0 %v2219_v35  ;;  %v2206_v22 = vsel %vm2190_vm13, %v2182_v55, %v2198_v15  ;;  %vm2192_vm15 = vcmp.gt.f32.partialorder %v2184_v56, 0.0  ;;  %v2231_v23 = vsel %vm910_vm9, %v2215_v6, -inf  ;;  %v2225_v24 = vsel %vm910_vm9, %v2213_v10, -inf }
 0x9ce   : > { %v2217_v25 = vadd.f32 %v2209_v17, %v4891_v7  ;;  %v2214_v28 = vadd.f32 %v2206_v22, %v4900_v18  ;;  %v4908_v50 = vsel %vm1909_vm14, 0.0, %v4399_v58  ;;  %v2208_v26 = vsel %vm2192_vm15, %v2184_v56, %v2200_v19 }
 0x9cf   : > { %v2202_v29 = vmul.f32 0.2, %v2186_v21  ;;  %vm2194_vm6 = vcmp.gt.f32.partialorder %v2186_v21, 0.0  ;;  %v2216_v32 = vadd.f32 %v2208_v26, %v4908_v50  ;;  %v4914_v33 = vsel %vm1911_vm5, 0.0, %v4399_v58 }
 0x9d0   : > { %v2237_v30 = vsel %vm910_vm9, %v2217_v25, -inf  ;;  %v2228_v31 = vsel %vm910_vm9, %v2214_v28, -inf }
 0x9d1   : > { %2232 = vmax.xlane.f32.xlu1 %v2231_v23  ;;  %2226 = vmax.xlane.f32.xlu0 %v2225_v24  ;;  %v2210_v34 = vsel %vm2194_vm6, %v2186_v21, %v2202_v29  ;;  %v2234_v36 = vsel %vm910_vm9, %v2216_v32, -inf }
 0x9d2   : > { %v2218_v37 = vadd.f32 %v2210_v34, %v4914_v33 }
 0x9d4   : > { %v2240_v38 = vsel %vm910_vm9, %v2218_v37, -inf }
 0x9d5   : > { %2238 = vmax.xlane.f32.xlu1 %v2237_v30  ;;  %2229 = vmax.xlane.f32.xlu0 %v2228_v31 }
 0x9d9   : > { %2235 = vmax.xlane.f32.xlu0 %v2234_v36 }
 0x9dd   : > { %2241 = vmax.xlane.f32.xlu0 %v2240_v38 }
 0xa5a   : > { %v2224_v39 = vpop.xlane.xlu1 %2223  ;;  %v2221_v40 = vpop.xlane.xlu0 %2220 }
 0xa5b   : > { %v2244_v46 = vsub.f32 %v2212_v2, %v2224_v39  ;;  %v2243_v47 = vsub.f32 %v2211_v4, %v2221_v40  ;;  %v4327_v40 = vld [vmem:[%s5145_s6] ss:$0 sm:$0xff] }
 0xa5d   : > { %v2253_v43 = vmul.f32 1.442695, %v2244_v46  ;;  %v2251_v49 = vmul.f32 1.442695, %v2243_v47 }
 0xa5e   : > { %v2233_v52 = vpop.xlane.xlu1 %2232  ;;  %v2227_v53 = vpop.xlane.xlu0 %2226 }
 0xa5f   : > { %4250 = vpow2.f32 %v2253_v43  ;;  %v2245_v58 = vsub.f32 %v2213_v10, %v2227_v53  ;;  %v2247_v54 = vsub.f32 %v2215_v6, %v2233_v52 }
 0xa60   : > { %4252 = vpow2.f32 %v2251_v49 }
 0xa61   : > { %v2255_v55 = vmul.f32 1.442695, %v2245_v58  ;;  %v2259_v59 = vmul.f32 1.442695, %v2247_v54 }
 0xa62   : > { %v2239_v56 = vpop.xlane.xlu1 %2238  ;;  %v2230_v57 = vpop.xlane.xlu0 %2229 }
 0xa63   : > { %v2246_v3 = vsub.f32 %v2214_v28, %v2230_v57  ;;  %4254 = vpow2.f32 %v2255_v55  ;;  %v2249_v0 = vsub.f32 %v2217_v25, %v2239_v56 }
 0xa65   : > { %v2257_v61 = vmul.f32 1.442695, %v2246_v3  ;;  %v2263_v4 = vmul.f32 1.442695, %v2249_v0 }
 0xa66   : > { %v2236_v62 = vpop.xlane.xlu0 %2235 }
 0xa67   : > { %v2248_v1 = vsub.f32 %v2216_v32, %v2236_v62  ;;  %4256 = vpow2.f32 %v2257_v61 }
 0xa68   : > { %4258 = vpow2.f32 %v2259_v59 }
 0xa69   : > { %v4251_v2 = vpop.eup %4250  ;;  %v2261_v63 = vmul.f32 1.442695, %v2248_v1 }
 0xa6a   : > { %v4253_v5 = vpop.eup %4252  ;;  %v2242_v8 = vpop.xlane.xlu0 %2241 }
 0xa6b   : > { %4260 = vpow2.f32 %v2261_v63  ;;  %3865 = vmatprep.mubr.msk.f32.mxu0 %vm910_vm9, %v4253_v5  ;;  %v2250_v6 = vsub.f32 %v2218_v37, %v2242_v8 }
 0xa6c   : > { %3866 = vmatmul.mubr.msk.f32.vlgmr.msra.gmra.mrb[42].mxu0 %vm910_vm9, %v4251_v2  ;;  %4262 = vpow2.f32 %v2263_v4 }
 0xa6d   : > { %v2265_v9 = vmul.f32 1.442695, %v2250_v6  ;;  %v4255_v27 = vpop.eup %4254 }
 0xa6e   : > { %3868 = vmatprep.mubr.msk.f32.mxu0 %vm910_vm9, %v4255_v27 }
 0xa6f   : > { %4264 = vpow2.f32 %v2265_v9 }
 0xa71   : > { %v4257_v35 = vpop.eup %4256 }
 0xa72   : > { %v4259_v10 = vpop.eup %4258  ;;  %3869 = vmatmul.mubr.msk.f32.gmra.mrb[44].mxu0 %vm910_vm9, %v4257_v35 }
 0xa73   : > { %3871 = vmatprep.mubr.msk.f32.mxu0 %vm910_vm9, %v4259_v10 }
 0xa75   : > { %v4261_v15 = vpop.eup %4260 }
 0xa76   : > { %v4263_v17 = vpop.eup %4262  ;;  %3872 = vmatmul.mubr.msk.f32.gmra.mrb[46].mxu0 %vm910_vm9, %v4261_v15 }
 0xa77   : > { %3874 = vmatprep.mubr.msk.f32.mxu0 %vm910_vm9, %v4263_v17 }
 0xa79   : > { %v4265_v19 = vpop.eup %4264 }
 0xa7a   : > { %3875 = vmatmul.mubr.msk.f32.gmra.mrb[48].mxu0 %vm910_vm9, %v4265_v19 }
 0xa7b   : > { %3909 = vmatprep.mubr.msk.f32.mxu0 %vm4397_vm1, %v4398_v14 }
 0xb3f   : > { %v3867_v21 = vpop.f32.mrb[42].mxu0 }
 0xb40   : > { %2411 = vperm.xlu0 %4182, %v3867_v21   ;;  %v2365_v22 = vpop.f32.mrb[43].mxu0 }
 0xb41   : > { %2406 = vperm.xlu1 %4183, %v2365_v22  }
 0xb45   : > { %v3870_v44 = vpop.f32.mrb[44].mxu0 }
 0xb46   : > { %v2375_v23 = vpop.f32.mrb[45].mxu0 }
 0xb47   : > { %2416 = vperm.xlu1 %4183, %v2375_v23  }
 0xb49   : > { %v3873_v24 = vpop.f32.mrb[46].mxu0 }
 0xb4a   : > { %v2385_v25 = vpop.f32.mrb[47].mxu0 }
 0xb4b   : > { %2421 = vperm.xlu1 %4183, %v3870_v44   ;;  %2426 = vperm.xlu0 %4182, %v2385_v25  }
 0xb4d   : > { %v3876_v28 = vpop.f32.mrb[48].mxu0 }
 0xb4e   : > { %v2395_v26 = vpop.f32.mrb[49].mxu0 }
 0xb4f   : > { %2431 = vperm.xlu1 %4183, %v3873_v24   ;;  %2436 = vperm.xlu0 %4182, %v2395_v26  }
 0xb53   : > { %2441 = vperm.xlu1 %4183, %v3876_v28  }
 0xbbf   : > { %v2412_v29 = vpop.permute.xlu0 %2411 }
 0xbc0   : > { %4266 = vrcp.f32 %v2412_v29  ;;  %v2407_v30 = vpop.permute.xlu1 %2406 }
 0xbc1   : > { %4268 = vrcp.f32 %v2407_v30 }
 0xbc6   : > { %v2417_v31 = vpop.permute.xlu1 %2416 }
 0xbc7   : > { %4270 = vrcp.f32 %v2417_v31 }
 0xbca   : > { %v4267_v32 = vpop.eup %4266  ;;  %v2422_v37 = vpop.permute.xlu1 %2421 }
 0xbcb   : > { %v4269_v34 = vpop.eup %4268  ;;  %v2447_v36 = vmul.f32 %v4267_v32, %v3867_v21  ;;  %v2427_v38 = vpop.permute.xlu0 %2426  ;;  %4272 = vrcp.f32 %v2422_v37 }
 0xbcc   : > { %v2445_v39 = vmul.f32 %v4269_v34, %v2365_v22  ;;  %4274 = vrcp.f32 %v2427_v38 }
 0xbcd   : > { %v2461_v46 = vadd.f32 %v4327_v40, %v2447_v36 }
 0xbce   : > { %v2460_v47 = vadd.f32 %v4327_v40, %v2445_v39  ;;  %v2432_v43 = vpop.permute.xlu1 %2431 }
 0xbcf   : > { %v2437_v49 = vpop.permute.xlu0 %2436  ;;  %4276 = vrcp.f32 %v2432_v43  ;;  %v2469_v53 = vmax.f32 %v2461_v46, 0.0 }
 0xbd0   : > { %v2468_v52 = vmax.f32 %v2460_v47, 0.0  ;;  %4278 = vrcp.f32 %v2437_v49 }
 0xbd1   : > { %v4271_v58 = vpop.eup %4270 }
 0xbd2   : > { %3881 = vmatprep.mubr.msk.f32.mxu1 %vm606_vm0, %v2468_v52  ;;  %v2442_v54 = vpop.permute.xlu1 %2441  ;;  %v2449_v55 = vmul.f32 %v4271_v58, %v2375_v23 }
 0xbd3   : > { %3882 = vmatmul.mubr.msk.f32.vlgmr.msra.gmra.mrb[6].mxu1 %vm606_vm0, %v2469_v53  ;;  %4280 = vrcp.f32 %v2442_v54 }
 0xbd4   : > { %v2462_v56 = vadd.f32 %v4327_v40, %v2449_v55 }
 0xbd5   : > { %v4273_v57 = vpop.eup %4272 }
 0xbd6   : > { %v4275_v3 = vpop.eup %4274  ;;  %v2470_v59 = vmax.f32 %v2462_v56, 0.0  ;;  %v2451_v0 = vmul.f32 %v4273_v57, %v3870_v44 }
 0xbd7   : > { %v2453_v61 = vmul.f32 %v4275_v3, %v2385_v25 }
 0xbd8   : > { %3884 = vmatprep.mubr.msk.f32.mxu1 %vm606_vm0, %v2470_v59  ;;  %v2463_v62 = vadd.f32 %v4327_v40, %v2451_v0 }
 0xbd9   : > { %v4277_v1 = vpop.eup %4276  ;;  %v2464_v2 = vadd.f32 %v4327_v40, %v2453_v61 }
 0xbda   : > { %v4279_v4 = vpop.eup %4278  ;;  %v2471_v63 = vmax.f32 %v2463_v62, 0.0  ;;  %v2455_v5 = vmul.f32 %v4277_v1, %v3873_v24 }
 0xbdb   : > { %v2472_v8 = vmax.f32 %v2464_v2, 0.0  ;;  %v2457_v6 = vmul.f32 %v4279_v4, %v2395_v26 }
 0xbdc   : > { %3885 = vmatmul.mubr.msk.f32.gmra.mrb[8].mxu1 %vm606_vm0, %v2471_v63  ;;  %v2465_v9 = vadd.f32 %v4327_v40, %v2455_v5 }
 0xbdd   : > { %v4281_v27 = vpop.eup %4280  ;;  %3887 = vmatprep.mubr.msk.f32.mxu1 %vm606_vm0, %v2472_v8  ;;  %v2466_v35 = vadd.f32 %v4327_v40, %v2457_v6 }
 0xbde   : > { %v2473_v10 = vmax.f32 %v2465_v9, 0.0  ;;  %v2459_v15 = vmul.f32 %v4281_v27, %v3876_v28 }
 0xbdf   : > { %v2474_v17 = vmax.f32 %v2466_v35, 0.0 }
 0xbe0   : > { %3888 = vmatmul.mubr.msk.f32.gmra.mrb[10].mxu1 %vm606_vm0, %v2473_v10  ;;  %v2467_v19 = vadd.f32 %v4327_v40, %v2459_v15 }
 0xbe1   : > { %3890 = vmatprep.mubr.msk.f32.mxu1 %vm606_vm0, %v2474_v17 }
 0xbe2   : > { %v2475_v21 = vmax.f32 %v2467_v19, 0.0 }
 0xbe4   : > { %3891 = vmatmul.mubr.msk.f32.gmra.mrb[12].mxu1 %vm606_vm0, %v2475_v21 }
 0xca6   : > { %v3883_v22 = vpop.f32.mrb[6].mxu1 }
 0xca7   : > { %v2824_v44 = vsel %vm961_vm2, 1.0, %v3883_v22  ;;  %2704 = vperm.xlu1 %4183, %v3883_v22   ;;  %v2566_v23 = vpop.f32.mrb[7].mxu1 }
 0xca8   : > { %v4088_v24 = vpack.c.bf16 %v3883_v22, %v2566_v23  ;;  %v2823_v25 = vsel %vm961_vm2, 1.0, %v2566_v23  ;;  %2700 = vperm.xlu0 %4182, %v2566_v23  }
 0xca9   : > { %v4103_v28 = vpack.c.bf16 %v2824_v44, %v2823_v25 }
 0xcaa   : > { %4090 = vmatpush3.bf16.xpose.msk.msra.mxu0 %vm4580_vm4, %v4088_v24 }
 0xcab   : > { %4104 = vmatprep.subr.bf16.mxu1 %v4103_v28  ;;  %4091 = vmatprep.subr.bf16.mxu0 %v4396_v13 }
 0xcac   : > { %4106 = vmatpush3.bf16.msra.mxu1 %v4103_v28 }
 0xcaf   : > { %v3886_v26 = vpop.f32.mrb[8].mxu1 }
 0xcb0   : > { %v2826_v29 = vsel %vm961_vm2, 1.0, %v3886_v26  ;;  %2712 = vperm.xlu1 %4183, %v3886_v26   ;;  %v2576_v30 = vpop.f32.mrb[9].mxu1 }
 0xcb1   : > { %v4092_v31 = vpack.c.bf16 %v3886_v26, %v2576_v30  ;;  %v2825_v32 = vsel %vm961_vm2, 1.0, %v2576_v30  ;;  %2708 = vperm.xlu0 %4182, %v2576_v30  }
 0xcb2   : > { %v4107_v34 = vpack.c.bf16 %v2826_v29, %v2825_v32 }
 0xcb3   : > { %v3889_v36 = vpop.f32.mrb[10].mxu1  ;;  %4094 = vmatpush3.bf16.xpose.msk.msra.mxu0 %vm4580_vm4, %v4092_v31 }
 0xcb4   : > { %v2828_v37 = vsel %vm961_vm2, 1.0, %v3889_v36  ;;  %4108 = vmatprep.subr.bf16.mxu1 %v4107_v34  ;;  %2720 = vperm.xlu1 %4183, %v3889_v36   ;;  %v2586_v38 = vpop.f32.mrb[11].mxu1 }
 0xcb5   : > { %v4096_v39 = vpack.c.bf16 %v3889_v36, %v2586_v38  ;;  %v2827_v40 = vsel %vm961_vm2, 1.0, %v2586_v38  ;;  %4110 = vmatpush3.bf16.msra.mxu1 %v4107_v34  ;;  %2716 = vperm.xlu0 %4182, %v2586_v38  }
 0xcb6   : > { %v4111_v46 = vpack.c.bf16 %v2828_v37, %v2827_v40  ;;  %4095 = vmatprep.subr.bf16.mxu0 %v4396_v13 }
 0xcb7   : > { %v3892_v47 = vpop.f32.mrb[12].mxu1 }
 0xcb8   : > { %v2830_v43 = vsel %vm961_vm2, 1.0, %v3892_v47  ;;  %4112 = vmatprep.subr.bf16.mxu1 %v4111_v46  ;;  %2728 = vperm.xlu1 %4183, %v3892_v47   ;;  %v2596_v49 = vpop.f32.mrb[13].mxu1 }
 0xcb9   : > { %v4100_v52 = vpack.c.bf16 %v3892_v47, %v2596_v49  ;;  %v2829_v53 = vsel %vm961_vm2, 1.0, %v2596_v49  ;;  %4114 = vmatpush3.bf16.msra.mxu1 %v4111_v46  ;;  %2724 = vperm.xlu0 %4182, %v2596_v49  }
 0xcba   : > { %v4115_v58 = vpack.c.bf16 %v2830_v43, %v2829_v53 }
 0xcbb   : > { %4098 = vmatpush3.bf16.xpose.msk.msra.mxu0 %vm4580_vm4, %v4096_v39 }
 0xcbc   : > { %4116 = vmatprep.subr.bf16.mxu1 %v4115_v58  ;;  %4099 = vmatprep.subr.bf16.mxu0 %v4396_v13 }
 0xcbd   : > { %4118 = vmatpush3.bf16.msra.mxu1 %v4115_v58 }
 0xcbe   : > { %4119 = vmatprep.subr.bf16.mxu1 %v4396_v13 }
 0xcc3   : > { %4102 = vmatpush3.bf16.xpose.msk.msra.mxu0 %vm4580_vm4, %v4100_v52 }
 0xcca   : > { %3910 = vmatmul.mubr.msk.f32.vlgmr.msra.gmra.mrb[50].mxu0 %vm736_vm3, %v4328_v16 }
 0xd26   : > { %v2705_v56 = vpop.permute.xlu1 %2704 }
 0xd27   : > { %v2701_v54 = vpop.permute.xlu0 %2700 }
 0xd2f   : > { %v2713_v57 = vpop.permute.xlu1 %2712 }
 0xd30   : > { %v2709_v55 = vpop.permute.xlu0 %2708 }
 0xd33   : > { %v2721_v62 = vpop.permute.xlu1 %2720 }
 0xd34   : > { %v2717_v3 = vpop.permute.xlu0 %2716 }
 0xd37   : > { %v2729_v25 = vpop.permute.xlu1 %2728 }
 0xd38   : > { %v2725_v1 = vpop.permute.xlu0 %2724 }
 0xd9d   : > { %v2695_v59 = vpop.f32.mrb[50].mxu0 }
 0xd9e   : > { %v2734_v0 = vrot.slane %v2695_v59, %v4626_v51  ;;  %v3911_v61 = vpop.f32.mrb[51].mxu0 }
 0xda0   : > { %v2736_v2 = vadd.f32 %v2734_v0, %v2705_v56  ;;  %v2735_v20 = vadd.f32 %v2734_v0, %v2701_v54  ;;  %v2739_v4 = vadd.f32 %v2734_v0, %v2717_v3  ;;  %v2737_v63 = vadd.f32 %v2734_v0, %v2709_v55 }
 0xda1   : > { %v2741_v5 = vadd.f32 %v2734_v0, %v2725_v1  ;;  %v2738_v8 = vadd.f32 %v2734_v0, %v2713_v57  ;;  %v2740_v6 = vadd.f32 %v2734_v0, %v2721_v62 }
 0xda2   : > { %vm2744_vm2 = vcmp.gt.f32.partialorder %v2736_v2, 0.0  ;;  %v2752_v9 = vmul.f32 0.2, %v2736_v2  ;;  %vm2743_vm3 = vcmp.gt.f32.partialorder %v2735_v20, 0.0  ;;  %v2751_v27 = vmul.f32 0.2, %v2735_v20 }
 0xda3   : > { %vm2747_vm4 = vcmp.gt.f32.partialorder %v2739_v4, 0.0  ;;  %v2755_v35 = vmul.f32 0.2, %v2739_v4  ;;  %vm2745_vm7 = vcmp.gt.f32.partialorder %v2737_v63, 0.0  ;;  %v2753_v10 = vmul.f32 0.2, %v2737_v63 }
 0xda4   : > { %v2760_v15 = vsel %vm2744_vm2, %v2736_v2, %v2752_v9  ;;  %v2759_v17 = vsel %vm2743_vm3, %v2735_v20, %v2751_v27  ;;  %vm2749_vm8 = vcmp.gt.f32.partialorder %v2741_v5, 0.0  ;;  %v2757_v19 = vmul.f32 0.2, %v2741_v5 }
 0xda5   : > { %v2768_v21 = vadd.f32 %v2760_v15, %v4874_v48  ;;  %v2767_v22 = vadd.f32 %v2759_v17, %v4878_v41  ;;  %v2763_v44 = vsel %vm2747_vm4, %v2739_v4, %v2755_v35  ;;  %v2761_v23 = vsel %vm2745_vm7, %v2737_v63, %v2753_v10 }
 0xda6   : > { %v2771_v24 = vadd.f32 %v2763_v44, %v4881_v42  ;;  %vm2746_vm11 = vcmp.gt.f32.partialorder %v2738_v8, 0.0  ;;  %v2769_v29 = vadd.f32 %v2761_v23, %v4884_v45  ;;  %v2754_v30 = vmul.f32 0.2, %v2738_v8 }
 0xda7   : > { %v2778_v28 = vsel %vm910_vm9, %v2768_v21, -inf  ;;  %v2775_v26 = vsel %vm910_vm9, %v2767_v22, -inf  ;;  %v2765_v31 = vsel %vm2749_vm8, %v2741_v5, %v2757_v19  ;;  %v2756_v32 = vmul.f32 0.2, %v2740_v6 }
 0xda8   : > { %2779 = vmax.xlane.f32.xlu1 %v2778_v28  ;;  %2776 = vmax.xlane.f32.xlu0 %v2775_v26  ;;  %v2742_v48 = vadd.f32 %v2734_v0, %v2729_v25  ;;  %v2762_v34 = vsel %vm2746_vm11, %v2738_v8, %v2754_v30  ;;  %vm2748_vm12 = vcmp.gt.f32.partialorder %v2740_v6, 0.0  ;;  %v2787_v41 = vsel %vm910_vm9, %v2771_v24, -inf  ;;  %v573_v30 = vld [vmem:[#allocation2] sm:$0x1] }
 0xda9   : > { %v2781_v42 = vsel %vm910_vm9, %v2769_v29, -inf  ;;  %v2773_v36 = vadd.f32 %v2765_v31, %v4891_v7  ;;  %v2770_v37 = vadd.f32 %v2762_v34, %v4900_v18  ;;  %v2764_v38 = vsel %vm2748_vm12, %v2740_v6, %v2756_v32 }
 0xdaa   : > { %v2758_v45 = vmul.f32 0.2, %v2742_v48  ;;  %vm2750_vm13 = vcmp.gt.f32.partialorder %v2742_v48, 0.0  ;;  %v2772_v46 = vadd.f32 %v2764_v38, %v4908_v50  ;;  %v4400_v31 = vmov 0  }
 0xdab   : > { %v2793_v39 = vsel %vm910_vm9, %v2773_v36, -inf  ;;  %v2784_v40 = vsel %vm910_vm9, %v2770_v37, -inf }
 0xdac   : > { %2788 = vmax.xlane.f32.xlu1 %v2787_v41  ;;  %2782 = vmax.xlane.f32.xlu0 %v2781_v42  ;;  %v2766_v47 = vsel %vm2750_vm13, %v2742_v48, %v2758_v45  ;;  %v2790_v43 = vsel %vm910_vm9, %v2772_v46, -inf }
 0xdad   : > { %v2774_v7 = vadd.f32 %v2766_v47, %v4914_v33 }
 0xdaf   : > { %v2796_v18 = vsel %vm910_vm9, %v2774_v7, -inf }
 0xdb0   : > { %2794 = vmax.xlane.f32.xlu1 %v2793_v39  ;;  %2785 = vmax.xlane.f32.xlu0 %v2784_v40 }
 0xdb4   : > { %2791 = vmax.xlane.f32.xlu0 %v2790_v43 }
 0xdb8   : > { %2797 = vmax.xlane.f32.xlu0 %v2796_v18  ;;  %v1856_v18 = vld [vmem:[%s5016_s29] sm:$0x1] }
 0xe35   : > { %v2780_v49 = vpop.xlane.xlu1 %2779  ;;  %v2777_v52 = vpop.xlane.xlu0 %2776 }
 0xe36   : > { %v2800_v53 = vsub.f32 %v2768_v21, %v2780_v49  ;;  %v2799_v58 = vsub.f32 %v2767_v22, %v2777_v52 }
 0xe38   : > { %v2809_v16 = vmul.f32 1.442695, %v2800_v53  ;;  %v2807_v54 = vmul.f32 1.442695, %v2799_v58 }
 0xe39   : > { %v2789_v55 = vpop.xlane.xlu1 %2788  ;;  %v2783_v56 = vpop.xlane.xlu0 %2782 }
 0xe3a   : > { %4282 = vpow2.f32 %v2809_v16  ;;  %v2801_v50 = vsub.f32 %v2769_v29, %v2783_v56  ;;  %v2803_v57 = vsub.f32 %v2771_v24, %v2789_v55 }
 0xe3b   : > { %4284 = vpow2.f32 %v2807_v54 }
 0xe3c   : > { %v2811_v3 = vmul.f32 1.442695, %v2801_v50  ;;  %v2815_v61 = vmul.f32 1.442695, %v2803_v57 }
 0xe3d   : > { %v2795_v59 = vpop.xlane.xlu1 %2794  ;;  %v2786_v0 = vpop.xlane.xlu0 %2785 }
 0xe3e   : > { %v2802_v33 = vsub.f32 %v2770_v37, %v2786_v0  ;;  %4286 = vpow2.f32 %v2811_v3  ;;  %v2805_v62 = vsub.f32 %v2773_v36, %v2795_v59 }
 0xe40   : > { %v2813_v1 = vmul.f32 1.442695, %v2802_v33  ;;  %v2819_v63 = vmul.f32 1.442695, %v2805_v62 }
 0xe41   : > { %v2792_v2 = vpop.xlane.xlu0 %2791 }
 0xe42   : > { %v2804_v20 = vsub.f32 %v2772_v46, %v2792_v2  ;;  %4288 = vpow2.f32 %v2813_v1 }
 0xe43   : > { %4290 = vpow2.f32 %v2815_v61 }
 0xe44   : > { %v4283_v4 = vpop.eup %4282  ;;  %v2817_v5 = vmul.f32 1.442695, %v2804_v20 }
 0xe45   : > { %v4285_v8 = vpop.eup %4284  ;;  %v2798_v6 = vpop.xlane.xlu0 %2797 }
 0xe46   : > { %4292 = vpow2.f32 %v2817_v5  ;;  %3928 = vmatprep.mubr.msk.f32.mxu1 %vm910_vm9, %v4285_v8  ;;  %v2806_v9 = vsub.f32 %v2774_v7, %v2798_v6 }
 0xe47   : > { %3929 = vmatmul.mubr.msk.f32.vlgmr.msra.gmra.mrb[14].mxu1 %vm910_vm9, %v4283_v4  ;;  %4294 = vpow2.f32 %v2819_v63 }
 0xe48   : > { %v2821_v27 = vmul.f32 1.442695, %v2806_v9  ;;  %v4287_v35 = vpop.eup %4286 }
 0xe49   : > { %3931 = vmatprep.mubr.msk.f32.mxu1 %vm910_vm9, %v4287_v35 }
 0xe4a   : > { %4296 = vpow2.f32 %v2821_v27 }
 0xe4c   : > { %v4289_v10 = vpop.eup %4288 }
 0xe4d   : > { %v4291_v15 = vpop.eup %4290  ;;  %3932 = vmatmul.mubr.msk.f32.gmra.mrb[16].mxu1 %vm910_vm9, %v4289_v10 }
 0xe4e   : > { %3934 = vmatprep.mubr.msk.f32.mxu1 %vm910_vm9, %v4291_v15 }
 0xe50   : > { %v4293_v17 = vpop.eup %4292 }
 0xe51   : > { %v4295_v19 = vpop.eup %4294  ;;  %3935 = vmatmul.mubr.msk.f32.gmra.mrb[18].mxu1 %vm910_vm9, %v4293_v17 }
 0xe52   : > { %3937 = vmatprep.mubr.msk.f32.mxu1 %vm910_vm9, %v4295_v19 }
 0xe54   : > { %v4297_v21 = vpop.eup %4296 }
 0xe55   : > { %3938 = vmatmul.mubr.msk.f32.gmra.mrb[20].mxu1 %vm910_vm9, %v4297_v21  ;;  %vm1860_vm9 = vcmask 516096  }
 0xe56   : > { %3956 = vmatprep.mubr.msk.f32.mxu1 %vm4397_vm1, %v4398_v14  ;;  %vm1857_vm1 = vcmp.eq.f32.partialorder %v1856_v18, 0.0 }
 0xe57   : > { %v1858_v50 = vsel %vm1857_vm1, -1e+09, %v4398_v14 }
 0xf1a   : > { %v3930_v22 = vpop.f32.mrb[14].mxu1 }
 0xf1b   : > { %2967 = vperm.xlu0 %4182, %v3930_v22   ;;  %v2921_v44 = vpop.f32.mrb[15].mxu1 }
 0xf1c   : > { %2962 = vperm.xlu1 %4183, %v2921_v44  }
 0xf20   : > { %v3933_v23 = vpop.f32.mrb[16].mxu1 }
 0xf21   : > { %v2931_v24 = vpop.f32.mrb[17].mxu1 }
 0xf22   : > { %2972 = vperm.xlu1 %4183, %v2931_v24  }
 0xf24   : > { %v4999_v25 = vpop.f32.mrb[18].mxu1 }
 0xf25   : > { %v2941_v28 = vpop.f32.mrb[19].mxu1 }
 0xf26   : > { %2977 = vperm.xlu1 %4183, %v3933_v23   ;;  %2982 = vperm.xlu0 %4182, %v2941_v28  }
 0xf28   : > { %v5001_v26 = vpop.f32.mrb[20].mxu1 }
 0xf29   : > { %v5003_v29 = vpop.f32.mrb[21].mxu1 }
 0xf2a   : > { %2987 = vperm.xlu1 %4183, %v4999_v25   ;;  %2992 = vperm.xlu0 %4182, %v5003_v29  }
 0xf2e   : > { %2997 = vperm.xlu1 %4183, %v5001_v26   ;;  %4184 = vset.pattern.permute.xlu0 %v4400_v31 }
 0xf2f   : > { %1752 = vperm.xlu0 %4184, %v573_v30  }
 0xf33   : > { %4185 = vset.pattern.permute.xlu0 %v4395_v12  ;;  %v4329_v12 = vld [vmem:[%s5148_s9] ss:$0 sm:$0xff] }
 0xf9a   : > { %v2968_v32 = vpop.permute.xlu0 %2967 }
 0xf9b   : > { %4298 = vrcp.f32 %v2968_v32  ;;  %v2963_v48 = vpop.permute.xlu1 %2962 }
 0xf9c   : > { %4300 = vrcp.f32 %v2963_v48 }
 0xfa1   : > { %v2973_v34 = vpop.permute.xlu1 %2972 }
 0xfa2   : > { %4302 = vrcp.f32 %v2973_v34 }
 0xfa5   : > { %v4299_v41 = vpop.eup %4298  ;;  %v2978_v37 = vpop.permute.xlu1 %2977 }
 0xfa6   : > { %v4301_v42 = vpop.eup %4300  ;;  %v3003_v36 = vmul.f32 %v4299_v41, %v3930_v22  ;;  %v2983_v38 = vpop.permute.xlu0 %2982  ;;  %4304 = vrcp.f32 %v2978_v37 }
 0xfa7   : > { %v3001_v45 = vmul.f32 %v4301_v42, %v2921_v44  ;;  %4306 = vrcp.f32 %v2983_v38  ;;  %v4330_v44 = vld [vmem:[%s5149_s10] sm:$0x1] }
 0xfa8   : > { %v3017_v39 = vadd.f32 %v4329_v12, %v3003_v36 }
 0xfa9   : > { %v3016_v40 = vadd.f32 %v4329_v12, %v3001_v45  ;;  %v2988_v46 = vpop.permute.xlu1 %2987 }
 0xfaa   : > { %v2993_v47 = vpop.permute.xlu0 %2992  ;;  %v3025_v43 = vmax.f32 %v3017_v39, 0.0  ;;  %4308 = vrcp.f32 %v2988_v46 }
 0xfab   : > { %v3024_v7 = vmax.f32 %v3016_v40, 0.0  ;;  %4310 = vrcp.f32 %v2993_v47 }
 0xfac   : > { %3482 = vst.msk [vmem:[%s4774_s0 + $0x48] sm:$0xff] %vm606_vm0, %v3025_v43  ;;  %v4303_v49 = vpop.eup %4302 }
 0xfad   : > { %3481 = vst.msk [vmem:[%s4774_s0 + $0x40] sm:$0xff] %vm606_vm0, %v3024_v7  ;;  %v4120_v52 = vpack.c.bf16 %v3025_v43, %v3024_v7  ;;  %v3005_v53 = vmul.f32 %v4303_v49, %v2931_v24  ;;  %v2998_v58 = vpop.permute.xlu1 %2997 }
 0xfae   : > { %4312 = vrcp.f32 %v2998_v58  ;;  %v1753_v16 = vpop.permute.xlu0 %1752 }
 0xfaf   : > { %4122 = vmatpush3.bf16.xpose.msk.msra.mxu1 %vm4780_vm10, %v4120_v52  ;;  %v3018_v54 = vadd.f32 %v4329_v12, %v3005_v53  ;;  %v1758_v55 = vrot.slane %v1753_v16, %v4626_v51 }
 0xfb0   : > { %4123 = vmatprep.subr.bf16.mxu1 %v4396_v13  ;;  %v4305_v56 = vpop.eup %4304 }
 0xfb1   : > { %v4307_v57 = vpop.eup %4306  ;;  %v3007_v3 = vmul.f32 %v4305_v56, %v3933_v23  ;;  %v1853_v59 = vadd.f32 %v4831_v60, %v1758_v55  ;;  %v3026_v0 = vmax.f32 %v3018_v54, 0.0 }
 0xfb2   : > { %v3009_v33 = vmul.f32 %v4307_v57, %v2941_v28 }
 0xfb3   : > { %v3019_v61 = vadd.f32 %v4329_v12, %v3007_v3  ;;  %v1859_v62 = vadd.f32 %v1858_v50, %v1853_v59  ;;  %3483 = vst.msk [vmem:[%s4774_s0 + $0x50] sm:$0xff] %vm606_vm0, %v3026_v0 }
 0xfb4   : > { %v4309_v1 = vpop.eup %4308  ;;  %v3020_v51 = vadd.f32 %v4329_v12, %v3009_v33 }
 0xfb5   : > { %v4311_v2 = vpop.eup %4310  ;;  %v3011_v20 = vmul.f32 %v4309_v1, %v4999_v25  ;;  %v1861_v4 = vsel %vm1860_vm9, %v1859_v62, -inf  ;;  %v3027_v63 = vmax.f32 %v3019_v61, 0.0 }
 0xfb6   : > { %v3013_v60 = vmul.f32 %v4311_v2, %v5003_v29  ;;  %1862 = vmax.xlane.f32.xlu1 %v1861_v4  ;;  %v3028_v5 = vmax.f32 %v3020_v51, 0.0 }
 0xfb7   : > { %v3021_v8 = vadd.f32 %v4329_v12, %v3011_v20  ;;  %3484 = vst.msk [vmem:[%s4774_s0 + $0x58] sm:$0xff] %vm606_vm0, %v3027_v63  ;;  %v4124_v6 = vpack.c.bf16 %v3027_v63, %v3026_v0 }
 0xfb8   : > { %v4313_v9 = vpop.eup %4312  ;;  %v3022_v27 = vadd.f32 %v4329_v12, %v3013_v60  ;;  %3485 = vst.msk [vmem:[%s4774_s0 + $0x60] sm:$0xff] %vm606_vm0, %v3028_v5 }
 0xfb9   : > { %v3015_v35 = vmul.f32 %v4313_v9, %v5001_v26  ;;  %4126 = vmatpush3.bf16.xpose.msk.msra.mxu1 %vm4780_vm10, %v4124_v6  ;;  %v3029_v10 = vmax.f32 %v3021_v8, 0.0 }
 0xfba   : > { %4127 = vmatprep.subr.bf16.mxu1 %v4396_v13  ;;  %v3030_v15 = vmax.f32 %v3022_v27, 0.0 }
 0xfbb   : > { %v3023_v17 = vadd.f32 %v4329_v12, %v3015_v35  ;;  %3486 = vst.msk [vmem:[%s4774_s0 + $0x68] sm:$0xff] %vm606_vm0, %v3029_v10  ;;  %v4128_v19 = vpack.c.bf16 %v3029_v10, %v3028_v5 }
 0xfbc   : > { %3487 = vst.msk [vmem:[%s4774_s0 + $0x70] sm:$0xff] %vm606_vm0, %v3030_v15 }
 0xfbd   : > { %v3031_v21 = vmax.f32 %v3023_v17, 0.0 }
 0xfbf   : > { %3488 = vst.msk [vmem:[%s4774_s0 + $0x78] sm:$0xff] %vm606_vm0, %v3031_v21  ;;  %v4132_v22 = vpack.c.bf16 %v3031_v21, %v3030_v15  ;;  %s516_s0 = sand.u32 1, %s4385_s16  }
 0xfc0   : > { %s3341_s27 = sshll.u32 %s516_s0, 1  ;;  %s5096_s1 = scalar_lea.sflag [#allocation4], %s516_s0 }
 0xfc1   : > { %4130 = vmatpush3.bf16.xpose.msk.msra.mxu1 %vm4780_vm10, %v4128_v19  ;;  %s5064_s26 = scalar_lea.vmem [#allocation3], %s3341_s27  ;;  %s5078_s27 = scalar_lea.vmem %s5151_s12, %s5171_s30 }
 0xfc2   : > { %4131 = vmatprep.subr.bf16.mxu1 %v4396_v13  ;;  %v3498_v13 = vld [vmem:[%s5016_s29 + $0x1] sm:$0x1]  ;;  %s549_s29 = scalar_lea.vmem %s5142_s3, %s5171_s30  ;;  %s3510_s30 = sshll.u32 %s4503_s11, 5 }
 0xfc3   : > { %vm3137_vm14 = vcmp.eq.f32.partialorder %v3498_v13, 0.0  ;;  %v1879_v12 = vld [vmem:[%s549_s29] sm:$0x1]  ;;  %v3500_v3 = vld [vmem:[%s549_s29 + $0x1] sm:$0x1]  ;;  %s5089_s21 = scalar_lea.hbm %s5152_s13, %s3510_s30  ;;  %s3195_s19 = sshll.u32 %s5064_s26, 4  ;;  %s5092_s19 = int_to_ptr.vmem [resolvable:$true] %s3195_s19 }
 0xfc4   : > { %v3138_v29 = vsel %vm3137_vm14, -1e+09, %v4398_v14  ;;  %s4331_s29 = scalar_lea.vmem %s5092_s19, 32  ;;  %s4401_s11 = smov [#allocation3]  }
 0xfc5   : > { %p4332_p11 = scmp.ne.s32.totalorder %s5092_s19, %s4331_s29  ;;  %s4335_s2 = sshll.u32 %s4401_s11, 4  ;;  %s4336_s2 = int_to_ptr.vmem [resolvable:$false] %s4335_s2 }
 0xfc6   : > { %s4337_s28 = scalar_lea.vmem %s4336_s2, 64  ;;  %p4338_p0 = scmp.lt.s32.totalorder %s5092_s19, %s4336_s2 }
 0xfc7   : > { %p4333_p12 = pnand %p4332_p11, %p4520_p5  ;;  %p4339_p1 = scmp.lt.s32.totalorder %s4337_s28, %s4331_s29 }
 0xfc9   : > { %4134 = vmatpush3.bf16.xpose.msk.msra.mxu1 %vm4780_vm10, %v4132_v22  ;;  %p4334_p13 = pneg %p4333_p12  ;;  %p4340_p2 = por %p4339_p1, %p4338_p0 }
 0xfcb   : > { %p4341_p3 = pnand %p4340_p2, %p4334_p13 }
 0xfd0   : > { %3957 = vmatmul.mubr.msk.f32.vlgmr.msra.gmra.mrb[22].mxu1 %vm606_vm0, %v4330_v44  ;;  %vm1884_vm0 = vcmask 0  }
0x1043   : > { %v1863_v23 = vpop.xlane.xlu1 %1862 }
0x1044   : > { %v1864_v24 = vsub.f32 %v1859_v62, %v1863_v23 }
0x1046   : > { %v1865_v25 = vmul.f32 1.442695, %v1864_v24 }
0x1048   : > { %4314 = vpow2.f32 %v1865_v25 }
0x1052   : > { %v4315_v28 = vpop.eup %4314 }
0x1053   : > { %v1867_v26 = vsel %vm1860_vm9, %v4315_v28, 0.0 }
0x1054   : > { %1868 = vadd.xlane.f32.xlu1 %v1867_v26 }
0x10a3   : > { %v3131_v11 = vpop.f32.mrb[22].mxu1 }
0x10a4   : > { %v3132_v30 = vadd.f32 %v3131_v11, %v1758_v55  ;;  %v3958_v31 = vpop.f32.mrb[23].mxu1 }
0x10a6   : > { %v3139_v32 = vadd.f32 %v3138_v29, %v3132_v30 }
0x10a8   : > { %v3140_v48 = vsel %vm1860_vm9, %v3139_v32, -inf }
0x10a9   : > { %3141 = vmax.xlane.f32.xlu0 %v3140_v48 }
0x10e1   : > { %v1869_v34 = vpop.xlane.xlu1 %1868 }
0x10e2   : > { %4316 = vrcp.f32 %v1869_v34 }
0x10e3   : > { %4318 = vlog2.f32 %v1869_v34 }
0x10ec   : > { %v4317_v41 = vpop.eup %4316 }
0x10ed   : > { %v4319_v42 = vpop.eup %4318  ;;  %v1871_v36 = vmul.f32 %v4317_v41, %v4315_v28 }
0x10ee   : > { %v1874_v37 = vmul.f32 0.6931472, %v4319_v42 }
0x10ef   : > { %1872 = vst.msk [vmem:[%s5064_s26] sm:$0x1] %vm1860_vm9, %v1871_v36 }
0x10f0   : > { %v1875_v14 = vsub.f32 %v1864_v24, %v1874_v37 }
0x10f2   : > { %v1876_v38 = vmax.f32 %v1875_v14, -23.02585 }
0x10f4   : > { %v1877_v45 = vmin.f32 %v1876_v38, 0.0 }
0x10f6   : > { %v1878_v39 = vsub.f32 0.0, %v1877_v45 }
0x10f8   : > { %v1880_v40 = vmul.f32 %v1879_v12, %v1878_v39 }
0x10fa   : > { %v1881_v46 = vsel %vm1860_vm9, %v1880_v40, 0.0 }
0x10fb   : > { %1882 = vadd.xlane.f32.xlu1 %v1881_v46 }
0x1136   : > { %v3142_v47 = vpop.xlane.xlu0 %3141 }
0x1137   : > { %v3143_v43 = vsub.f32 %v3139_v32, %v3142_v47 }
0x1139   : > { %v3144_v7 = vmul.f32 1.442695, %v3143_v43 }
0x113b   : > { %4320 = vpow2.f32 %v3144_v7 }
0x1145   : > { %v4321_v18 = vpop.eup %4320 }
0x1146   : > { %v3146_v49 = vsel %vm1860_vm9, %v4321_v18, 0.0 }
0x1147   : > { %3147 = vadd.xlane.f32.xlu0 %v3146_v49 }
0x1188   : > { %v1883_v52 = vpop.xlane.xlu1 %1882 }
0x1189   : > { %1885 = vst.msk [vmem:[%s5078_s27] sm:$0x1] %vm1884_vm0, %v1883_v52 }
0x11d4   : > { %v3148_v53 = vpop.xlane.xlu0 %3147 }
0x11d5   : > { %4322 = vrcp.f32 %v3148_v53 }
0x11d6   : > { %4324 = vlog2.f32 %v3148_v53 }
0x11df   : > { %v4323_v58 = vpop.eup %4322 }
0x11e0   : > { %v4325_v16 = vpop.eup %4324  ;;  %v3150_v54 = vmul.f32 %v4323_v58, %v4321_v18 }
0x11e1   : > { %v3154_v55 = vmul.f32 0.6931472, %v4325_v16 }
0x11e2   : > { %3499 = vst.msk [vmem:[%s5064_s26 + $0x1] sm:$0x1] %vm1860_vm9, %v3150_v54 }
0x11e3   : > { %v3155_v56 = vsub.f32 %v3143_v43, %v3154_v55 }
0x11e5   : > { %v3156_v50 = vmax.f32 %v3155_v56, -23.02585 }
0x11e7   : > { %v3157_v57 = vmin.f32 %v3156_v50, 0.0 }
0x11e9   : > { %v3158_v59 = vsub.f32 0.0, %v3157_v57 }
0x11eb   : > { %v3161_v0 = vmul.f32 %v3500_v3, %v3158_v59 }
0x11ed   : > { %v3162_v33 = vsel %vm1860_vm9, %v3161_v0, 0.0 }
0x11ee   : > { %3163 = vadd.xlane.f32.xlu0 %v3162_v33 }
0x11ef   : > { %4344 = shalt.err (!%p4341_p3)
}
0x11f0   : > { %s4345_s0 = scalar_lea.hbm %s5089_s21, 32  ;;  %s4349_s22 = scalar_lea.hbm %s5152_s13, 64 }
0x11f1   : > { %p4346_p4 = scmp.ne.s32.totalorder %s5089_s21, %s4345_s0  ;;  %p4350_p9 = scmp.lt.u32.totalorder %s5089_s21, %s5152_s13 }
0x11f2   : > { %p4351_p10 = scmp.lt.u32.totalorder %s4349_s22, %s4345_s0  ;;  %p4353_p12 = scmp.lt.u32.totalorder %s4345_s0, %s5089_s21 }
0x11f3   : > { %p4347_p7 = pnand %p4346_p4, %p4520_p5 }
0x11f4   : > { %p4352_p11 = por %p4351_p10, %p4350_p9 }
0x11f5   : > { %p4348_p8 = pneg %p4347_p7 }
0x11f6   : > { %p4354_p13 = por %p4353_p12, %p4352_p11 }
0x11f8   : > { %p4355_p0 = pnand %p4354_p13, %p4348_p8 }
0x11fa   : > { %4358 = shalt.err (!%p4355_p0)
}
0x11fb   : > { %s4402_s29 = smov 16   ;;  %s4403_s28 = smov 1  }
0x11fc   : > { %4135 = dma.vmem_to_hbm [thread:$0]  (%p4520_p5), %s5092_s19, 32, %s5089_s21, %s5096_s1, %s4402_s29, %s4402_s29, %s4403_s28  }
0x127b   : > { %v3164_v61 = vpop.xlane.xlu0 %3163 }
0x127c   : > { %3501 = vst.msk [vmem:[%s5078_s27 + $0x1] sm:$0x1] %vm1884_vm0, %v3164_v61 }
0x127d PF: > { %p4141_p1 = scmp.ge.s32.totalorder %s4393_s18, 2  ;;  %s3221_s0 = sand.u32 1, %s4381_s15  }
0x127e   : > { %s3222_s26 = scalar_lea.sflag [#allocation4], %s3221_s0 }
0x127f   : > { %p4138_p2 = pnand %p4141_p1, %p4524_p6 }
0x1281   : > { %4376 = dma.done.wait (!%p4138_p2), %s3222_s26, 32  }
0x1282   : > { %4378 = vsyncadd (!%p4138_p2), %s3222_s26, 4294967264  ;;  %p27_p5 = scmp.ge.s32.totalorder %s4507_s20, 4   ;;  %s5166_s15 = smov %s4385_s16 }
0x1283   : > { %s5167_s16 = smov %s4389_s17  ;;  %s5168_s17 = smov %s4518_s23 }
0x1284   : > { %s5169_s18 = smov %s4507_s20  ;;  %29 = sbr.rel (!%p27_p5) target bundleno = 7 (0x7), region = 143 }
0x128b   :  { %3236 = vsyncpa [#allocation4], 1 }
0x128c   :  { %3238 = vsyncpa [#allocation4 + $0x1], 1 }

</bundles_post_ra>
